<compile_context>
chip_gen: v5e
topology: v5e:2x2
jax: 0.10.0
libtpu: 0.0.40
codegen_flags: <defaults>
</compile_context>

<pallas_src>
import jax
import jax.numpy as jnp
import numpy as np
from jax.experimental import pallas as pl
from jax.experimental.pallas import tpu as pltpu

_EPS = 1e-5  # PyTorch BatchNorm1d default eps


def _make_cnn_kernel(N, H, depth, Lp, Wseg, Wtot, compute_dtype):
    """Build the Pallas kernel body for fixed static shapes."""

    def kernel(thr_ref, invc_ref, x_ref, w0_ref, wl_ref, g_ref, bt_ref,
               wf_ref, bf_ref, out_ref, act_ref, stk_ref):
        # Per-segment lane index, computed once in-kernel (no mask DMA, no
        # 8x-sublane-padded (1, Wtot) mask tiles in VMEM).
        lane_in_seg = jax.lax.broadcasted_iota(jnp.int32, (1, Wtot), 1) % Wseg

        def bn_relu(y, l):
            # nn.BatchNorm1d training mode: biased batch statistics over the
            # valid (N, L) positions, single pass (sum + sum-of-squares).
            # jnp.where (not y*mask) so a hypothetical inf in the garbage tail
            # can't produce NaN.  Affine fused into 2 VPU passes.
            mb = lane_in_seg < thr_ref[l]                # (1, Wtot) bool
            ym = jnp.where(mb, y, 0.0)                   # (H, Wtot)
            invc = invc_ref[l]                           # f32 scalar from SMEM
            ssum = ym.sum(axis=1, keepdims=True)         # (H, 1)
            ssq = (ym * ym).sum(axis=1, keepdims=True)   # (H, 1)
            mean = ssum * invc
            var = jnp.maximum(ssq * invc - mean * mean, 0.0)
            inv = g_ref[l] * jax.lax.rsqrt(var + _EPS)   # (H, 1)
            shift = bt_ref[l] - mean * inv               # (H, 1)
            return jnp.maximum(y * inv + shift, 0.0)

        # Zero the 128-lane halo tail once; tap reads of the last segment's
        # over-computed positions land here.
        act_ref[:, Wtot:] = jnp.zeros((H, 128), compute_dtype)

        # ---- layer 0: Conv1d(1 -> H, k=3).  C_in == 1, so three shifted
        # broadcast multiplies on the VPU over the batch-folded row.
        # Conv bias dropped: it is exactly cancelled by BN mean subtraction.
        xin = x_ref[...]                                 # (1, Wtot + 128) f32
        w0 = w0_ref[...]                                 # (3, H, 1) f32
        y = (w0[0] * xin[:, 0:Wtot]
             + w0[1] * xin[:, 1:1 + Wtot]
             + w0[2] * xin[:, 2:2 + Wtot])               # (H, Wtot)
        act_ref[:, :Wtot] = bn_relu(y, 0).astype(compute_dtype)

        # ---- layers 1 .. depth-1: Conv1d(H -> H, k=3) as ONE K=3H matmul per
        # layer.  Tap-shifted views are sliced directly from act_ref (already
        # compute_dtype) into the stacked (3H, Wtot) operand.
        def layer_body(l):
            for k in range(3):
                stk_ref[k * H:(k + 1) * H, :] = act_ref[:, k:k + Wtot]
            y = jnp.dot(wl_ref[l], stk_ref[...],
                        preferred_element_type=jnp.float32)   # bias dropped
            act_ref[:, :Wtot] = bn_relu(y, l + 1).astype(compute_dtype)

        if depth - 1 <= 8:
            # Small depth: static unroll (LLO scheduler visibility).
            for l in range(depth - 1):
                layer_body(l)
        else:
            # Production depth: bound live ranges / code size.
            def body(l, carry):
                layer_body(l)
                return carry
            jax.lax.fori_loop(0, depth - 1, body, 0)

        # ---- final Conv1d(H -> 1, k=1) as a (1,H)@(H,Wtot) MXU matmul and a
        # single lane-dense (1, Wtot) store (wrapper does the per-sample slice).
        z = jnp.dot(wf_ref[...], act_ref[:, :Wtot],
                    preferred_element_type=jnp.float32) + bf_ref[...]
        out_ref[...] = z

    return kernel


def cnn_forward_pallas(x, params, *, hidden_size, depth,
                       compute_dtype=jnp.bfloat16):
    """Forward pass equivalent to CNN(hidden_size, depth)(x) for x: (N, 1, L)."""
    N, Cin, L = x.shape
    assert Cin == 1
    H = hidden_size
    P = 2 ** depth - 1
    # glue: nn.ReflectionPad1d(2**depth - 1)  (requires P <= L - 1)
    xpad = jnp.pad(x, ((0, 0), (0, 0), (P, P)), mode="reflect").astype(jnp.float32)
    Lp = L + 2 * P
    L_final = Lp - 2 * depth
    assert L_final >= 1

    # Fold the batch into the lane axis: each sample owns a lane-dense segment
    # of width Wseg.  Positions beyond the valid length are over-computed
    # garbage that is masked out of BN statistics and sliced away at the end.
    Wseg = ((Lp + 127) // 128) * 128
    assert Wseg >= Lp, "tap reads at valid positions must not cross segments"
    Wtot = N * Wseg
    xrows = jnp.pad(xpad[:, 0, :], ((0, 0), (0, Wseg - Lp)))        # (N, Wseg)
    xpacked = jnp.pad(xrows.reshape(1, Wtot), ((0, 0), (0, 128)))   # (1, Wtot+128)

    # Per-layer valid-length thresholds + 1/count scalars (SMEM; masks are
    # generated in-kernel from these).
    thr = jnp.asarray([Lp - 2 * (l + 1) for l in range(depth)], jnp.int32)
    invc = jnp.asarray([1.0 / (N * (Lp - 2 * (l + 1))) for l in range(depth)],
                       jnp.float32)

    # Parameter repack: taps fused into a single K=3H contraction; matmul
    # operands cast to `compute_dtype` (bf16 default => f32 MXU accumulation);
    # BatchNorm parameters / statistics stay f32.  Conv biases b0/bl are NOT
    # shipped (cancelled by training-mode BN).
    w0 = jnp.transpose(params["w0"], (2, 0, 1)).astype(jnp.float32)   # (3, H, 1)
    wl = params["wl"]                                                 # (depth-1, H, H, 3)
    wl_fused = jnp.concatenate([wl[..., k] for k in range(3)],
                               axis=-1).astype(compute_dtype)         # (depth-1, H, 3H)
    gamma = params["gamma"].reshape(depth, H, 1).astype(jnp.float32)
    beta = params["beta"].reshape(depth, H, 1).astype(jnp.float32)
    wf = params["wf"].reshape(1, H).astype(compute_dtype)
    bf = params["bf"].reshape(1, 1).astype(jnp.float32)

    kernel = _make_cnn_kernel(N, H, depth, Lp, Wseg, Wtot, compute_dtype)

    # Explicit VMEM budget: v5e default scoped limit is only 16 MiB; v7x has a
    # 64 MiB ceiling per TensorCore, so cap at 56 MiB with headroom.
    itm = jnp.dtype(compute_dtype).itemsize
    footprint = (H * (Wtot + 128) * itm          # act scratch
                 + 3 * H * Wtot * itm            # stacked tap operand
                 + (Wtot + 128) * 4 + Wtot * 4   # input row + output slab
                 + max(depth - 1, 1) * H * 3 * H * itm   # fused weights
                 + 2 * depth * H * 128 * 4       # gamma/beta (lane padded)
                 + (1 << 20))
    vmem_limit = int(min(56 << 20, max(16 << 20, 4 * footprint)))

    vmem = pl.BlockSpec(memory_space=pltpu.MemorySpace.VMEM)
    smem = pl.BlockSpec(memory_space=pltpu.MemorySpace.SMEM)
    out = pl.pallas_call(
        kernel,
        out_shape=jax.ShapeDtypeStruct((1, Wtot), jnp.float32),
        in_specs=[smem, smem] + [vmem] * 7,
        out_specs=vmem,
        scratch_shapes=[
            pltpu.VMEM((H, Wtot + 128), compute_dtype),   # activations + halo
            pltpu.VMEM((3 * H, Wtot), compute_dtype),     # stacked tap operand
        ],
        compiler_params=pltpu.CompilerParams(vmem_limit_bytes=vmem_limit),
    )(thr, invc, xpacked, w0, wl_fused, gamma, beta, wf, bf)

    return out.reshape(N, Wseg)[:, :L_final].reshape(N, 1, L_final)


def init_params(key, hidden_size, depth):
    """Deterministic, PyTorch-shaped parameter init (uniform ~ kaiming bound)."""
    H = hidden_size
    assert depth >= 2
    keys = jax.random.split(key, 2 * depth + 2)

    def uni(k, shape, fan_in):
        bound = 1.0 / np.sqrt(fan_in)
        return jax.random.uniform(k, shape, jnp.float32, -bound, bound)

    w0 = uni(keys[0], (H, 1, 3), 1 * 3)
    b0 = uni(keys[1], (H,), 1 * 3)
    wl = jnp.stack([uni(keys[2 + 2 * i], (H, H, 3), H * 3) for i in range(depth - 1)])
    bl = jnp.stack([uni(keys[3 + 2 * i], (H,), H * 3) for i in range(depth - 1)])
    wf = uni(keys[2 * depth], (1, H, 1), H * 1)
    bf = uni(keys[2 * depth + 1], (1,), H * 1)
    gamma = jnp.ones((depth, H), jnp.float32)   # BatchNorm1d default init
    beta = jnp.zeros((depth, H), jnp.float32)
    return dict(w0=w0, b0=b0, wl=wl, bl=bl, wf=wf, bf=bf, gamma=gamma, beta=beta)


def cnn_forward_reference(x, params, *, hidden_size, depth):
    """Pure-JAX reference (same semantics, WITH conv biases) for checking."""
    P = 2 ** depth - 1
    a = jnp.pad(x, ((0, 0), (0, 0), (P, P)), mode="reflect")

    def conv1d(a, w, b):
        y = jax.lax.conv_general_dilated(
            a, w, window_strides=(1,), padding="VALID",
            dimension_numbers=("NCH", "OIH", "NCH"),
            precision=jax.lax.Precision.HIGHEST)
        return y + b[None, :, None]

    def bn_train(a, g, bta):
        mean = a.mean(axis=(0, 2), keepdims=True)
        var = ((a - mean) ** 2).mean(axis=(0, 2), keepdims=True)
        return (a - mean) * jax.lax.rsqrt(var + _EPS) * g[None, :, None] + bta[None, :, None]

    a = jax.nn.relu(bn_train(conv1d(a, params["w0"], params["b0"]),
                             params["gamma"][0], params["beta"][0]))
    for l in range(depth - 1):
        a = jax.nn.relu(bn_train(conv1d(a, params["wl"][l], params["bl"][l]),
                                 params["gamma"][l + 1], params["beta"][l + 1]))
    return conv1d(a, params["wf"], params["bf"])


if __name__ == "__main__":
    hidden_size, depth = 32, 4          # small shapes (default 64/4095 infeasible)
    N, L = 2, 16
    key = jax.random.PRNGKey(0)
    kx, kp = jax.random.split(key)
    x = jax.random.normal(kx, (N, 1, L), jnp.float32)
    params = init_params(kp, hidden_size, depth)

    ref = jax.block_until_ready(
        cnn_forward_reference(x, params, hidden_size=hidden_size, depth=depth))
    expected_L = L + 2 * (2 ** depth - 1) - 2 * depth

    # Strict semantic check: f32 matmul path (kernel drops b0/bl; BN cancels them).
    out_f32 = jax.block_until_ready(
        cnn_forward_pallas(x, params, hidden_size=hidden_size, depth=depth,
                           compute_dtype=jnp.float32))
    assert out_f32.shape == ref.shape == (N, 1, expected_L), (out_f32.shape, ref.shape)
    err = float(jnp.max(jnp.abs(out_f32 - ref)))
    assert err < 1e-2, f"f32 path max abs error {err}"

    # Fast path: bf16 activations + MXU operands, f32 accumulation / BN math.
    out_bf16 = jax.block_until_ready(
        cnn_forward_pallas(x, params, hidden_size=hidden_size, depth=depth,
                           compute_dtype=jnp.bfloat16))
    assert out_bf16.shape == ref.shape
    err_bf16 = float(jnp.max(jnp.abs(out_bf16 - ref)))
    assert err_bf16 < 1e-1, f"bf16 path max abs error {err_bf16}"

    print("KERNEL_OK")
</pallas_src>

<mosaic_0001>
module attributes {stable_mosaic.version = 11 : i64} {
  func.func @kernel(%arg0: memref<4xi32, #tpu.memory_space<smem>>, %arg1: memref<4xf32, #tpu.memory_space<smem>>, %arg2: memref<1x384xf32, #tpu.memory_space<vmem>>, %arg3: memref<3x32x1xf32, #tpu.memory_space<vmem>>, %arg4: memref<3x32x96xf32, #tpu.memory_space<vmem>>, %arg5: memref<4x32x1xf32, #tpu.memory_space<vmem>>, %arg6: memref<4x32x1xf32, #tpu.memory_space<vmem>>, %arg7: memref<1x32xf32, #tpu.memory_space<vmem>>, %arg8: memref<1x1xf32, #tpu.memory_space<vmem>>, %arg9: memref<1x256xf32, #tpu.memory_space<vmem>>, %arg10: memref<32x384xf32, #tpu.memory_space<vmem>>, %arg11: memref<96x256xf32, #tpu.memory_space<vmem>>) attributes {dimension_semantics = [], scalar_prefetch = 0 : i64, scratch_operands = 2 : i64, tpu.core_type = #tpu.core_type<tc>} {
    %0 = tpu.iota {dimensions = array<i32: 1>} : vector<1x256xi32>
    %c128_i32 = arith.constant 128 : i32
    %c0_i32 = arith.constant 0 : i32
    %1 = arith.cmpi eq, %c128_i32, %c0_i32 : i32
    %c1_i32 = arith.constant 1 : i32
    %2 = arith.select %1, %c1_i32, %c128_i32 : i32
    %3 = vector.broadcast %2 : i32 to vector<1x256xi32>
    %4 = arith.remsi %0, %3 : vector<1x256xi32>
    %c0_i32_0 = arith.constant 0 : i32
    %5 = vector.broadcast %c0_i32_0 : i32 to vector<1x256xi32>
    %6 = arith.cmpi ne, %4, %5 : vector<1x256xi32>
    %c0_i32_1 = arith.constant 0 : i32
    %7 = vector.broadcast %c0_i32_1 : i32 to vector<1x256xi32>
    %8 = arith.cmpi slt, %4, %7 : vector<1x256xi32>
    %c0_i32_2 = arith.constant 0 : i32
    %9 = arith.cmpi slt, %2, %c0_i32_2 : i32
    %10 = vector.broadcast %9 : i1 to vector<1x256xi1>
    %11 = vector.broadcast %10 : vector<1x256xi1> to vector<1x256xi1>
    %12 = arith.xori %8, %11 : vector<1x256xi1>
    %13 = arith.andi %12, %6 : vector<1x256xi1>
    %14 = vector.broadcast %2 : i32 to vector<1x256xi32>
    %15 = arith.addi %4, %14 : vector<1x256xi32>
    %16 = arith.select %13, %15, %4 : vector<1x256xi1>, vector<1x256xi32>
    %cst = arith.constant 0.000000e+00 : f32
    %17 = vector.broadcast %cst : f32 to vector<32x128xf32>
    %c0 = arith.constant 0 : index
    %c256 = arith.constant 256 : index
    %18 = vector.load %arg10[%c0, %c256] : memref<32x384xf32, #tpu.memory_space<vmem>>, vector<32x128xf32>
    tpu.vector_store %arg10[%c0, %c256], %17 {strides = array<i32>} : memref<32x384xf32, #tpu.memory_space<vmem>>, vector<32x128xf32>,
    %c0_3 = arith.constant 0 : index
    %c0_4 = arith.constant 0 : index
    %19 = vector.load %arg2[%c0_3, %c0_4] : memref<1x384xf32, #tpu.memory_space<vmem>>, vector<1x384xf32>
    %c0_5 = arith.constant 0 : index
    %c0_6 = arith.constant 0 : index
    %c0_7 = arith.constant 0 : index
    %20 = vector.load %arg3[%c0_5, %c0_6, %c0_7] : memref<3x32x1xf32, #tpu.memory_space<vmem>>, vector<3x32x1xf32>
    %21 = vector.extract_strided_slice %20 {offsets = [0, 0, 0], sizes = [1, 32, 1], strides = [1, 1, 1]} : vector<3x32x1xf32> to vector<1x32x1xf32>
    %22 = vector.shape_cast %21 : vector<1x32x1xf32> to vector<32x1xf32>
    %23 = vector.extract_strided_slice %19 {offsets = [0, 0], sizes = [1, 256], strides = [1, 1]} : vector<1x384xf32> to vector<1x256xf32>
    %24 = vector.broadcast %22 : vector<32x1xf32> to vector<32x256xf32>
    %25 = vector.broadcast %23 : vector<1x256xf32> to vector<32x256xf32>
    %26 = arith.mulf %24, %25 : vector<32x256xf32>
    %27 = vector.extract_strided_slice %20 {offsets = [1, 0, 0], sizes = [1, 32, 1], strides = [1, 1, 1]} : vector<3x32x1xf32> to vector<1x32x1xf32>
    %28 = vector.shape_cast %27 : vector<1x32x1xf32> to vector<32x1xf32>
    %29 = vector.extract_strided_slice %19 {offsets = [0, 1], sizes = [1, 256], strides = [1, 1]} : vector<1x384xf32> to vector<1x256xf32>
    %30 = vector.broadcast %28 : vector<32x1xf32> to vector<32x256xf32>
    %31 = vector.broadcast %29 : vector<1x256xf32> to vector<32x256xf32>
    %32 = arith.mulf %30, %31 : vector<32x256xf32>
    %33 = arith.addf %26, %32 : vector<32x256xf32>
    %34 = vector.extract_strided_slice %20 {offsets = [2, 0, 0], sizes = [1, 32, 1], strides = [1, 1, 1]} : vector<3x32x1xf32> to vector<1x32x1xf32>
    %35 = vector.shape_cast %34 : vector<1x32x1xf32> to vector<32x1xf32>
    %36 = vector.extract_strided_slice %19 {offsets = [0, 2], sizes = [1, 256], strides = [1, 1]} : vector<1x384xf32> to vector<1x256xf32>
    %37 = vector.broadcast %35 : vector<32x1xf32> to vector<32x256xf32>
    %38 = vector.broadcast %36 : vector<1x256xf32> to vector<32x256xf32>
    %39 = arith.mulf %37, %38 : vector<32x256xf32>
    %40 = arith.addf %33, %39 : vector<32x256xf32>
    %c0_8 = arith.constant 0 : index
    %41 = memref.load %arg0[%c0_8] : memref<4xi32, #tpu.memory_space<smem>>
    %42 = vector.broadcast %41 : i32 to vector<1x256xi32>
    %43 = arith.cmpi slt, %16, %42 : vector<1x256xi32>
    %cst_9 = arith.constant 0.000000e+00 : f32
    %44 = vector.shape_cast %43 : vector<1x256xi1> to vector<1x256xi1>
    %45 = vector.broadcast %44 : vector<1x256xi1> to vector<32x256xi1>
    %46 = vector.broadcast %cst_9 : f32 to vector<32x256xf32>
    %47 = arith.select %45, %40, %46 : vector<32x256xi1>, vector<32x256xf32>
    %c0_10 = arith.constant 0 : index
    %48 = memref.load %arg1[%c0_10] : memref<4xf32, #tpu.memory_space<smem>>
    %cst_11 = arith.constant dense<0.000000e+00> : vector<32xf32>
    %49 = vector.multi_reduction <add>, %47, %cst_11 [1] : vector<32x256xf32> to vector<32xf32>
    %50 = vector.shape_cast %49 : vector<32xf32> to vector<32x1xf32>
    %51 = arith.mulf %47, %47 : vector<32x256xf32>
    %cst_12 = arith.constant dense<0.000000e+00> : vector<32xf32>
    %52 = vector.multi_reduction <add>, %51, %cst_12 [1] : vector<32x256xf32> to vector<32xf32>
    %53 = vector.shape_cast %52 : vector<32xf32> to vector<32x1xf32>
    %54 = vector.broadcast %48 : f32 to vector<32x1xf32>
    %55 = arith.mulf %50, %54 : vector<32x1xf32>
    %56 = vector.broadcast %48 : f32 to vector<32x1xf32>
    %57 = arith.mulf %53, %56 : vector<32x1xf32>
    %58 = arith.mulf %55, %55 : vector<32x1xf32>
    %59 = arith.subf %57, %58 : vector<32x1xf32>
    %cst_13 = arith.constant 0.000000e+00 : f32
    %60 = vector.broadcast %cst_13 : f32 to vector<32x1xf32>
    %61 = arith.maximumf %59, %60 : vector<32x1xf32>
    %c0_14 = arith.constant 0 : index
    %c0_15 = arith.constant 0 : index
    %c0_16 = arith.constant 0 : index
    %62 = vector.load %arg5[%c0_14, %c0_15, %c0_16] : memref<4x32x1xf32, #tpu.memory_space<vmem>>, vector<1x32x1xf32>
    %63 = vector.shape_cast %62 : vector<1x32x1xf32> to vector<32x1xf32>
    %cst_17 = arith.constant 9.99999974E-6 : f32
    %64 = vector.broadcast %cst_17 : f32 to vector<32x1xf32>
    %65 = arith.addf %61, %64 : vector<32x1xf32>
    %66 = math.rsqrt %65 : vector<32x1xf32>
    %67 = arith.mulf %63, %66 : vector<32x1xf32>
    %c0_18 = arith.constant 0 : index
    %c0_19 = arith.constant 0 : index
    %c0_20 = arith.constant 0 : index
    %68 = vector.load %arg6[%c0_18, %c0_19, %c0_20] : memref<4x32x1xf32, #tpu.memory_space<vmem>>, vector<1x32x1xf32>
    %69 = vector.shape_cast %68 : vector<1x32x1xf32> to vector<32x1xf32>
    %70 = arith.mulf %55, %67 : vector<32x1xf32>
    %71 = arith.subf %69, %70 : vector<32x1xf32>
    %72 = vector.broadcast %67 : vector<32x1xf32> to vector<32x256xf32>
    %73 = arith.mulf %40, %72 : vector<32x256xf32>
    %74 = vector.broadcast %71 : vector<32x1xf32> to vector<32x256xf32>
    %75 = arith.addf %73, %74 : vector<32x256xf32>
    %cst_21 = arith.constant 0.000000e+00 : f32
    %76 = vector.broadcast %cst_21 : f32 to vector<32x256xf32>
    %77 = arith.maximumf %75, %76 : vector<32x256xf32>
    %c0_22 = arith.constant 0 : index
    %c0_23 = arith.constant 0 : index
    %78 = vector.load %arg10[%c0_22, %c0_23] : memref<32x384xf32, #tpu.memory_space<vmem>>, vector<32x256xf32>
    tpu.vector_store %arg10[%c0_22, %c0_23], %77 {strides = array<i32>} : memref<32x384xf32, #tpu.memory_space<vmem>>, vector<32x256xf32>,
    %c0_24 = arith.constant 0 : index
    %c0_25 = arith.constant 0 : index
    %79 = vector.load %arg10[%c0_24, %c0_25] : memref<32x384xf32, #tpu.memory_space<vmem>>, vector<32x256xf32>
    %c0_26 = arith.constant 0 : index
    %c0_27 = arith.constant 0 : index
    %80 = vector.load %arg11[%c0_26, %c0_27] : memref<96x256xf32, #tpu.memory_space<vmem>>, vector<32x256xf32>
    tpu.vector_store %arg11[%c0_26, %c0_27], %79 {strides = array<i32>} : memref<96x256xf32, #tpu.memory_space<vmem>>, vector<32x256xf32>,
    %c0_28 = arith.constant 0 : index
    %c1 = arith.constant 1 : index
    %81 = vector.load %arg10[%c0_28, %c1] : memref<32x384xf32, #tpu.memory_space<vmem>>, vector<32x256xf32>
    %c32 = arith.constant 32 : index
    %c0_29 = arith.constant 0 : index
    %82 = vector.load %arg11[%c32, %c0_29] : memref<96x256xf32, #tpu.memory_space<vmem>>, vector<32x256xf32>
    tpu.vector_store %arg11[%c32, %c0_29], %81 {strides = array<i32>} : memref<96x256xf32, #tpu.memory_space<vmem>>, vector<32x256xf32>,
    %c0_30 = arith.constant 0 : index
    %c2 = arith.constant 2 : index
    %83 = vector.load %arg10[%c0_30, %c2] : memref<32x384xf32, #tpu.memory_space<vmem>>, vector<32x256xf32>
    %c64 = arith.constant 64 : index
    %c0_31 = arith.constant 0 : index
    %84 = vector.load %arg11[%c64, %c0_31] : memref<96x256xf32, #tpu.memory_space<vmem>>, vector<32x256xf32>
    tpu.vector_store %arg11[%c64, %c0_31], %83 {strides = array<i32>} : memref<96x256xf32, #tpu.memory_space<vmem>>, vector<32x256xf32>,
    %c0_32 = arith.constant 0 : index
    %c0_33 = arith.constant 0 : index
    %c0_34 = arith.constant 0 : index
    %85 = vector.load %arg4[%c0_32, %c0_33, %c0_34] : memref<3x32x96xf32, #tpu.memory_space<vmem>>, vector<1x32x96xf32>
    %86 = vector.shape_cast %85 : vector<1x32x96xf32> to vector<32x96xf32>
    %c0_35 = arith.constant 0 : index
    %c0_36 = arith.constant 0 : index
    %87 = vector.load %arg11[%c0_35, %c0_36] : memref<96x256xf32, #tpu.memory_space<vmem>>, vector<96x256xf32>
    %cst_37 = arith.constant dense<0.000000e+00> : vector<32x256xf32>
    %88 = tpu.matmul %86, %87, %cst_37 {dimension_numbers = #tpu.dot_dimension_numbers<[1], [0], [0], [1], [0, 0, 1, 1], [], []>} : vector<32x96xf32>, vector<96x256xf32>, vector<32x256xf32> -> vector<32x256xf32>
    %c1_38 = arith.constant 1 : index
    %89 = memref.load %arg0[%c1_38] : memref<4xi32, #tpu.memory_space<smem>>
    %90 = vector.broadcast %89 : i32 to vector<1x256xi32>
    %91 = arith.cmpi slt, %16, %90 : vector<1x256xi32>
    %cst_39 = arith.constant 0.000000e+00 : f32
    %92 = vector.shape_cast %91 : vector<1x256xi1> to vector<1x256xi1>
    %93 = vector.broadcast %92 : vector<1x256xi1> to vector<32x256xi1>
    %94 = vector.broadcast %cst_39 : f32 to vector<32x256xf32>
    %95 = arith.select %93, %88, %94 : vector<32x256xi1>, vector<32x256xf32>
    %c1_40 = arith.constant 1 : index
    %96 = memref.load %arg1[%c1_40] : memref<4xf32, #tpu.memory_space<smem>>
    %cst_41 = arith.constant dense<0.000000e+00> : vector<32xf32>
    %97 = vector.multi_reduction <add>, %95, %cst_41 [1] : vector<32x256xf32> to vector<32xf32>
    %98 = vector.shape_cast %97 : vector<32xf32> to vector<32x1xf32>
    %99 = arith.mulf %95, %95 : vector<32x256xf32>
    %cst_42 = arith.constant dense<0.000000e+00> : vector<32xf32>
    %100 = vector.multi_reduction <add>, %99, %cst_42 [1] : vector<32x256xf32> to vector<32xf32>
    %101 = vector.shape_cast %100 : vector<32xf32> to vector<32x1xf32>
    %102 = vector.broadcast %96 : f32 to vector<32x1xf32>
    %103 = arith.mulf %98, %102 : vector<32x1xf32>
    %104 = vector.broadcast %96 : f32 to vector<32x1xf32>
    %105 = arith.mulf %101, %104 : vector<32x1xf32>
    %106 = arith.mulf %103, %103 : vector<32x1xf32>
    %107 = arith.subf %105, %106 : vector<32x1xf32>
    %cst_43 = arith.constant 0.000000e+00 : f32
    %108 = vector.broadcast %cst_43 : f32 to vector<32x1xf32>
    %109 = arith.maximumf %107, %108 : vector<32x1xf32>
    %c1_44 = arith.constant 1 : index
    %c0_45 = arith.constant 0 : index
    %c0_46 = arith.constant 0 : index
    %110 = vector.load %arg5[%c1_44, %c0_45, %c0_46] : memref<4x32x1xf32, #tpu.memory_space<vmem>>, vector<1x32x1xf32>
    %111 = vector.shape_cast %110 : vector<1x32x1xf32> to vector<32x1xf32>
    %cst_47 = arith.constant 9.99999974E-6 : f32
    %112 = vector.broadcast %cst_47 : f32 to vector<32x1xf32>
    %113 = arith.addf %109, %112 : vector<32x1xf32>
    %114 = math.rsqrt %113 : vector<32x1xf32>
    %115 = arith.mulf %111, %114 : vector<32x1xf32>
    %c1_48 = arith.constant 1 : index
    %c0_49 = arith.constant 0 : index
    %c0_50 = arith.constant 0 : index
    %116 = vector.load %arg6[%c1_48, %c0_49, %c0_50] : memref<4x32x1xf32, #tpu.memory_space<vmem>>, vector<1x32x1xf32>
    %117 = vector.shape_cast %116 : vector<1x32x1xf32> to vector<32x1xf32>
    %118 = arith.mulf %103, %115 : vector<32x1xf32>
    %119 = arith.subf %117, %118 : vector<32x1xf32>
    %120 = vector.broadcast %115 : vector<32x1xf32> to vector<32x256xf32>
    %121 = arith.mulf %88, %120 : vector<32x256xf32>
    %122 = vector.broadcast %119 : vector<32x1xf32> to vector<32x256xf32>
    %123 = arith.addf %121, %122 : vector<32x256xf32>
    %cst_51 = arith.constant 0.000000e+00 : f32
    %124 = vector.broadcast %cst_51 : f32 to vector<32x256xf32>
    %125 = arith.maximumf %123, %124 : vector<32x256xf32>
    %c0_52 = arith.constant 0 : index
    %c0_53 = arith.constant 0 : index
    %126 = vector.load %arg10[%c0_52, %c0_53] : memref<32x384xf32, #tpu.memory_space<vmem>>, vector<32x256xf32>
    tpu.vector_store %arg10[%c0_52, %c0_53], %125 {strides = array<i32>} : memref<32x384xf32, #tpu.memory_space<vmem>>, vector<32x256xf32>,
    %c0_54 = arith.constant 0 : index
    %c0_55 = arith.constant 0 : index
    %127 = vector.load %arg10[%c0_54, %c0_55] : memref<32x384xf32, #tpu.memory_space<vmem>>, vector<32x256xf32>
    %c0_56 = arith.constant 0 : index
    %c0_57 = arith.constant 0 : index
    %128 = vector.load %arg11[%c0_56, %c0_57] : memref<96x256xf32, #tpu.memory_space<vmem>>, vector<32x256xf32>
    tpu.vector_store %arg11[%c0_56, %c0_57], %127 {strides = array<i32>} : memref<96x256xf32, #tpu.memory_space<vmem>>, vector<32x256xf32>,
    %c0_58 = arith.constant 0 : index
    %c1_59 = arith.constant 1 : index
    %129 = vector.load %arg10[%c0_58, %c1_59] : memref<32x384xf32, #tpu.memory_space<vmem>>, vector<32x256xf32>
    %c32_60 = arith.constant 32 : index
    %c0_61 = arith.constant 0 : index
    %130 = vector.load %arg11[%c32_60, %c0_61] : memref<96x256xf32, #tpu.memory_space<vmem>>, vector<32x256xf32>
    tpu.vector_store %arg11[%c32_60, %c0_61], %129 {strides = array<i32>} : memref<96x256xf32, #tpu.memory_space<vmem>>, vector<32x256xf32>,
    %c0_62 = arith.constant 0 : index
    %c2_63 = arith.constant 2 : index
    %131 = vector.load %arg10[%c0_62, %c2_63] : memref<32x384xf32, #tpu.memory_space<vmem>>, vector<32x256xf32>
    %c64_64 = arith.constant 64 : index
    %c0_65 = arith.constant 0 : index
    %132 = vector.load %arg11[%c64_64, %c0_65] : memref<96x256xf32, #tpu.memory_space<vmem>>, vector<32x256xf32>
    tpu.vector_store %arg11[%c64_64, %c0_65], %131 {strides = array<i32>} : memref<96x256xf32, #tpu.memory_space<vmem>>, vector<32x256xf32>,
    %c1_66 = arith.constant 1 : index
    %c0_67 = arith.constant 0 : index
    %c0_68 = arith.constant 0 : index
    %133 = vector.load %arg4[%c1_66, %c0_67, %c0_68] : memref<3x32x96xf32, #tpu.memory_space<vmem>>, vector<1x32x96xf32>
    %134 = vector.shape_cast %133 : vector<1x32x96xf32> to vector<32x96xf32>
    %c0_69 = arith.constant 0 : index
    %c0_70 = arith.constant 0 : index
    %135 = vector.load %arg11[%c0_69, %c0_70] : memref<96x256xf32, #tpu.memory_space<vmem>>, vector<96x256xf32>
    %cst_71 = arith.constant dense<0.000000e+00> : vector<32x256xf32>
    %136 = tpu.matmul %134, %135, %cst_71 {dimension_numbers = #tpu.dot_dimension_numbers<[1], [0], [0], [1], [0, 0, 1, 1], [], []>} : vector<32x96xf32>, vector<96x256xf32>, vector<32x256xf32> -> vector<32x256xf32>
    %c2_72 = arith.constant 2 : index
    %137 = memref.load %arg0[%c2_72] : memref<4xi32, #tpu.memory_space<smem>>
    %138 = vector.broadcast %137 : i32 to vector<1x256xi32>
    %139 = arith.cmpi slt, %16, %138 : vector<1x256xi32>
    %cst_73 = arith.constant 0.000000e+00 : f32
    %140 = vector.shape_cast %139 : vector<1x256xi1> to vector<1x256xi1>
    %141 = vector.broadcast %140 : vector<1x256xi1> to vector<32x256xi1>
    %142 = vector.broadcast %cst_73 : f32 to vector<32x256xf32>
    %143 = arith.select %141, %136, %142 : vector<32x256xi1>, vector<32x256xf32>
    %c2_74 = arith.constant 2 : index
    %144 = memref.load %arg1[%c2_74] : memref<4xf32, #tpu.memory_space<smem>>
    %cst_75 = arith.constant dense<0.000000e+00> : vector<32xf32>
    %145 = vector.multi_reduction <add>, %143, %cst_75 [1] : vector<32x256xf32> to vector<32xf32>
    %146 = vector.shape_cast %145 : vector<32xf32> to vector<32x1xf32>
    %147 = arith.mulf %143, %143 : vector<32x256xf32>
    %cst_76 = arith.constant dense<0.000000e+00> : vector<32xf32>
    %148 = vector.multi_reduction <add>, %147, %cst_76 [1] : vector<32x256xf32> to vector<32xf32>
    %149 = vector.shape_cast %148 : vector<32xf32> to vector<32x1xf32>
    %150 = vector.broadcast %144 : f32 to vector<32x1xf32>
    %151 = arith.mulf %146, %150 : vector<32x1xf32>
    %152 = vector.broadcast %144 : f32 to vector<32x1xf32>
    %153 = arith.mulf %149, %152 : vector<32x1xf32>
    %154 = arith.mulf %151, %151 : vector<32x1xf32>
    %155 = arith.subf %153, %154 : vector<32x1xf32>
    %cst_77 = arith.constant 0.000000e+00 : f32
    %156 = vector.broadcast %cst_77 : f32 to vector<32x1xf32>
    %157 = arith.maximumf %155, %156 : vector<32x1xf32>
    %c2_78 = arith.constant 2 : index
    %c0_79 = arith.constant 0 : index
    %c0_80 = arith.constant 0 : index
    %158 = vector.load %arg5[%c2_78, %c0_79, %c0_80] : memref<4x32x1xf32, #tpu.memory_space<vmem>>, vector<1x32x1xf32>
    %159 = vector.shape_cast %158 : vector<1x32x1xf32> to vector<32x1xf32>
    %cst_81 = arith.constant 9.99999974E-6 : f32
    %160 = vector.broadcast %cst_81 : f32 to vector<32x1xf32>
    %161 = arith.addf %157, %160 : vector<32x1xf32>
    %162 = math.rsqrt %161 : vector<32x1xf32>
    %163 = arith.mulf %159, %162 : vector<32x1xf32>
    %c2_82 = arith.constant 2 : index
    %c0_83 = arith.constant 0 : index
    %c0_84 = arith.constant 0 : index
    %164 = vector.load %arg6[%c2_82, %c0_83, %c0_84] : memref<4x32x1xf32, #tpu.memory_space<vmem>>, vector<1x32x1xf32>
    %165 = vector.shape_cast %164 : vector<1x32x1xf32> to vector<32x1xf32>
    %166 = arith.mulf %151, %163 : vector<32x1xf32>
    %167 = arith.subf %165, %166 : vector<32x1xf32>
    %168 = vector.broadcast %163 : vector<32x1xf32> to vector<32x256xf32>
    %169 = arith.mulf %136, %168 : vector<32x256xf32>
    %170 = vector.broadcast %167 : vector<32x1xf32> to vector<32x256xf32>
    %171 = arith.addf %169, %170 : vector<32x256xf32>
    %cst_85 = arith.constant 0.000000e+00 : f32
    %172 = vector.broadcast %cst_85 : f32 to vector<32x256xf32>
    %173 = arith.maximumf %171, %172 : vector<32x256xf32>
    %c0_86 = arith.constant 0 : index
    %c0_87 = arith.constant 0 : index
    %174 = vector.load %arg10[%c0_86, %c0_87] : memref<32x384xf32, #tpu.memory_space<vmem>>, vector<32x256xf32>
    tpu.vector_store %arg10[%c0_86, %c0_87], %173 {strides = array<i32>} : memref<32x384xf32, #tpu.memory_space<vmem>>, vector<32x256xf32>,
    %c0_88 = arith.constant 0 : index
    %c0_89 = arith.constant 0 : index
    %175 = vector.load %arg10[%c0_88, %c0_89] : memref<32x384xf32, #tpu.memory_space<vmem>>, vector<32x256xf32>
    %c0_90 = arith.constant 0 : index
    %c0_91 = arith.constant 0 : index
    %176 = vector.load %arg11[%c0_90, %c0_91] : memref<96x256xf32, #tpu.memory_space<vmem>>, vector<32x256xf32>
    tpu.vector_store %arg11[%c0_90, %c0_91], %175 {strides = array<i32>} : memref<96x256xf32, #tpu.memory_space<vmem>>, vector<32x256xf32>,
    %c0_92 = arith.constant 0 : index
    %c1_93 = arith.constant 1 : index
    %177 = vector.load %arg10[%c0_92, %c1_93] : memref<32x384xf32, #tpu.memory_space<vmem>>, vector<32x256xf32>
    %c32_94 = arith.constant 32 : index
    %c0_95 = arith.constant 0 : index
    %178 = vector.load %arg11[%c32_94, %c0_95] : memref<96x256xf32, #tpu.memory_space<vmem>>, vector<32x256xf32>
    tpu.vector_store %arg11[%c32_94, %c0_95], %177 {strides = array<i32>} : memref<96x256xf32, #tpu.memory_space<vmem>>, vector<32x256xf32>,
    %c0_96 = arith.constant 0 : index
    %c2_97 = arith.constant 2 : index
    %179 = vector.load %arg10[%c0_96, %c2_97] : memref<32x384xf32, #tpu.memory_space<vmem>>, vector<32x256xf32>
    %c64_98 = arith.constant 64 : index
    %c0_99 = arith.constant 0 : index
    %180 = vector.load %arg11[%c64_98, %c0_99] : memref<96x256xf32, #tpu.memory_space<vmem>>, vector<32x256xf32>
    tpu.vector_store %arg11[%c64_98, %c0_99], %179 {strides = array<i32>} : memref<96x256xf32, #tpu.memory_space<vmem>>, vector<32x256xf32>,
    %c2_100 = arith.constant 2 : index
    %c0_101 = arith.constant 0 : index
    %c0_102 = arith.constant 0 : index
    %181 = vector.load %arg4[%c2_100, %c0_101, %c0_102] : memref<3x32x96xf32, #tpu.memory_space<vmem>>, vector<1x32x96xf32>
    %182 = vector.shape_cast %181 : vector<1x32x96xf32> to vector<32x96xf32>
    %c0_103 = arith.constant 0 : index
    %c0_104 = arith.constant 0 : index
    %183 = vector.load %arg11[%c0_103, %c0_104] : memref<96x256xf32, #tpu.memory_space<vmem>>, vector<96x256xf32>
    %cst_105 = arith.constant dense<0.000000e+00> : vector<32x256xf32>
    %184 = tpu.matmul %182, %183, %cst_105 {dimension_numbers = #tpu.dot_dimension_numbers<[1], [0], [0], [1], [0, 0, 1, 1], [], []>} : vector<32x96xf32>, vector<96x256xf32>, vector<32x256xf32> -> vector<32x256xf32>
    %c3 = arith.constant 3 : index
    %185 = memref.load %arg0[%c3] : memref<4xi32, #tpu.memory_space<smem>>
    %186 = vector.broadcast %185 : i32 to vector<1x256xi32>
    %187 = arith.cmpi slt, %16, %186 : vector<1x256xi32>
    %cst_106 = arith.constant 0.000000e+00 : f32
    %188 = vector.shape_cast %187 : vector<1x256xi1> to vector<1x256xi1>
    %189 = vector.broadcast %188 : vector<1x256xi1> to vector<32x256xi1>
    %190 = vector.broadcast %cst_106 : f32 to vector<32x256xf32>
    %191 = arith.select %189, %184, %190 : vector<32x256xi1>, vector<32x256xf32>
    %c3_107 = arith.constant 3 : index
    %192 = memref.load %arg1[%c3_107] : memref<4xf32, #tpu.memory_space<smem>>
    %cst_108 = arith.constant dense<0.000000e+00> : vector<32xf32>
    %193 = vector.multi_reduction <add>, %191, %cst_108 [1] : vector<32x256xf32> to vector<32xf32>
    %194 = vector.shape_cast %193 : vector<32xf32> to vector<32x1xf32>
    %195 = arith.mulf %191, %191 : vector<32x256xf32>
    %cst_109 = arith.constant dense<0.000000e+00> : vector<32xf32>
    %196 = vector.multi_reduction <add>, %195, %cst_109 [1] : vector<32x256xf32> to vector<32xf32>
    %197 = vector.shape_cast %196 : vector<32xf32> to vector<32x1xf32>
    %198 = vector.broadcast %192 : f32 to vector<32x1xf32>
    %199 = arith.mulf %194, %198 : vector<32x1xf32>
    %200 = vector.broadcast %192 : f32 to vector<32x1xf32>
    %201 = arith.mulf %197, %200 : vector<32x1xf32>
    %202 = arith.mulf %199, %199 : vector<32x1xf32>
    %203 = arith.subf %201, %202 : vector<32x1xf32>
    %cst_110 = arith.constant 0.000000e+00 : f32
    %204 = vector.broadcast %cst_110 : f32 to vector<32x1xf32>
    %205 = arith.maximumf %203, %204 : vector<32x1xf32>
    %c3_111 = arith.constant 3 : index
    %c0_112 = arith.constant 0 : index
    %c0_113 = arith.constant 0 : index
    %206 = vector.load %arg5[%c3_111, %c0_112, %c0_113] : memref<4x32x1xf32, #tpu.memory_space<vmem>>, vector<1x32x1xf32>
    %207 = vector.shape_cast %206 : vector<1x32x1xf32> to vector<32x1xf32>
    %cst_114 = arith.constant 9.99999974E-6 : f32
    %208 = vector.broadcast %cst_114 : f32 to vector<32x1xf32>
    %209 = arith.addf %205, %208 : vector<32x1xf32>
    %210 = math.rsqrt %209 : vector<32x1xf32>
    %211 = arith.mulf %207, %210 : vector<32x1xf32>
    %c3_115 = arith.constant 3 : index
    %c0_116 = arith.constant 0 : index
    %c0_117 = arith.constant 0 : index
    %212 = vector.load %arg6[%c3_115, %c0_116, %c0_117] : memref<4x32x1xf32, #tpu.memory_space<vmem>>, vector<1x32x1xf32>
    %213 = vector.shape_cast %212 : vector<1x32x1xf32> to vector<32x1xf32>
    %214 = arith.mulf %199, %211 : vector<32x1xf32>
    %215 = arith.subf %213, %214 : vector<32x1xf32>
    %216 = vector.broadcast %211 : vector<32x1xf32> to vector<32x256xf32>
    %217 = arith.mulf %184, %216 : vector<32x256xf32>
    %218 = vector.broadcast %215 : vector<32x1xf32> to vector<32x256xf32>
    %219 = arith.addf %217, %218 : vector<32x256xf32>
    %cst_118 = arith.constant 0.000000e+00 : f32
    %220 = vector.broadcast %cst_118 : f32 to vector<32x256xf32>
    %221 = arith.maximumf %219, %220 : vector<32x256xf32>
    %c0_119 = arith.constant 0 : index
    %c0_120 = arith.constant 0 : index
    %222 = vector.load %arg10[%c0_119, %c0_120] : memref<32x384xf32, #tpu.memory_space<vmem>>, vector<32x256xf32>
    tpu.vector_store %arg10[%c0_119, %c0_120], %221 {strides = array<i32>} : memref<32x384xf32, #tpu.memory_space<vmem>>, vector<32x256xf32>,
    %c0_121 = arith.constant 0 : index
    %c0_122 = arith.constant 0 : index
    %223 = vector.load %arg7[%c0_121, %c0_122] : memref<1x32xf32, #tpu.memory_space<vmem>>, vector<1x32xf32>
    %c0_123 = arith.constant 0 : index
    %c0_124 = arith.constant 0 : index
    %224 = vector.load %arg10[%c0_123, %c0_124] : memref<32x384xf32, #tpu.memory_space<vmem>>, vector<32x256xf32>
    %cst_125 = arith.constant dense<0.000000e+00> : vector<1x256xf32>
    %225 = tpu.matmul %223, %224, %cst_125 {dimension_numbers = #tpu.dot_dimension_numbers<[1], [0], [0], [1], [0, 0, 1, 1], [], []>} : vector<1x32xf32>, vector<32x256xf32>, vector<1x256xf32> -> vector<1x256xf32>
    %c0_126 = arith.constant 0 : index
    %c0_127 = arith.constant 0 : index
    %226 = vector.load %arg8[%c0_126, %c0_127] : memref<1x1xf32, #tpu.memory_space<vmem>>, vector<1x1xf32>
    %227 = vector.broadcast %226 : vector<1x1xf32> to vector<1x256xf32>
    %228 = arith.addf %225, %227 : vector<1x256xf32>
    %c0_128 = arith.constant 0 : index
    %c0_129 = arith.constant 0 : index
    %229 = vector.load %arg9[%c0_128, %c0_129] : memref<1x256xf32, #tpu.memory_space<vmem>>, vector<1x256xf32>
    tpu.vector_store %arg9[%c0_128, %c0_129], %228 {strides = array<i32>} : memref<1x256xf32, #tpu.memory_space<vmem>>, vector<1x256xf32>,
    return
  }
}

</mosaic_0001>

<bundles_post_ra>
// kernel: tpu_custom_call.1
= control target key start
LH: loop header
LB: loop body
LE: loop exit
PB: predicated region body
PF: predicated region fallthrough
CT: control target
= control target key end

     0   :  { %s3284_s0 = inlined_call_operand.vmem [shape: s32[4], index: 0, kind: input, shape index: {}]   ;;  %s3285_s1 = inlined_call_operand.vmem [shape: f32[4], index: 1, kind: input, shape index: {}]   ;;  %s3286_s2 = inlined_call_operand.vmem [shape: f32[1,384], index: 2, kind: input, shape index: {}]   ;;  %s3287_s3 = inlined_call_operand.vmem [shape: f32[3,32,1], index: 3, kind: input, shape index: {}]   ;;  %s3288_s4 = inlined_call_operand.vmem [shape: f32[3,32,96], index: 4, kind: input, shape index: {}]   ;;  %s3289_s5 = inlined_call_operand.vmem [shape: f32[4,32,1], index: 5, kind: input, shape index: {}]   ;;  %s3290_s6 = inlined_call_operand.vmem [shape: f32[4,32,1], index: 6, kind: input, shape index: {}]   ;;  %s3291_s7 = inlined_call_operand.vmem [shape: f32[1,32], index: 7, kind: input, shape index: {}]   ;;  %s3292_s8 = inlined_call_operand.<no memory space> [shape: f32[1,1], index: 8, kind: input, shape index: {}]   ;;  %s3293_s9 = inlined_call_operand.hbm [shape: f32[1,256], index: 9, kind: output, shape index: {}]  }
   0x1   :  { %v14_v0 = vstv %s3292_s8 }
   0x2   :  { %15 = vst [vmem:[#allocation4] sm:$0x1] %v14_v0 }
   0x3   :  { %16 = vsyncpa [#allocation7], 0 }
   0x4   :  { %17 = vsyncpa [#allocation9], 0 }
   0x5   :  { %18 = vsyncpa [#allocation6], 0  ;;  %s24_s13 = sshll.u32 %s3284_s0, 4  ;;  %s33_s16 = sshll.u32 %s3285_s1, 4  ;;  %s25_s13 = int_to_ptr.vmem [resolvable:$true] %s24_s13  ;;  %s34_s16 = int_to_ptr.vmem [resolvable:$true] %s33_s16 }
   0x6   :  { %s2385_s17 = smov [#allocation5]   ;;  %s2386_s18 = smov [#allocation8]  }
   0x7   :  { %27 = dma.vmem_to_smem %s25_s13, 16, %s2385_s17, [#allocation7]  }
   0x8   :  { %36 = dma.vmem_to_smem %s34_s16, 16, %s2386_s18, [#allocation9]  }
   0x9   :  { %2379 = dma.done.wait [#allocation7], 16  }
   0xa   :  { %2380 = vsyncadd [#allocation7], 4294967280 }
   0xb   :  { %2381 = dma.done.wait [#allocation9], 16  }
   0xc   :  { %2382 = vsyncadd [#allocation9], 4294967280 }
   0xd   :  { %59 = sfence }
   0xe   :  { %v103_v1 = vld [vmem:[%s3287_s3 + $0x58] sm:$0xff]  ;;  %v2387_v3 = vmov 0   ;;  %v102_v4 = vld [vmem:[%s3287_s3 + $0x50] sm:$0xff]  ;;  %v97_v6 = vld [vmem:[%s3287_s3 + $0x28] sm:$0xff]  ;;  %s2388_s0 = smov 127   ;;  %v60_v58 = vlaneseq  ;;  %vm207_vm0 = vcmask 1039360  }
   0xf   :  { %v99_v2 = vld [vmem:[%s3287_s3 + $0x38] sm:$0xff]  ;;  %2117 = vset.pattern.permute.xlu1 %v2387_v3  ;;  %2116 = vset.pattern.permute.xlu0 %v2387_v3  ;;  %v98_v5 = vld [vmem:[%s3287_s3 + $0x30] sm:$0xff]  ;;  %v96_v7 = vld [vmem:[%s3287_s3 + $0x20] sm:$0xff]  ;;  %vm300_vm1 = vcmask 1031168   ;;  %s341_s20 = sld [smem:[#allocation8]]  ;;  %s2391_s18 = smov [#allocation10]  }
  0x10   :  { %249 = vperm.xlu1 %2117, %v103_v1   ;;  %154 = vperm.xlu0 %2116, %v99_v2   ;;  %v101_v8 = vld [vmem:[%s3287_s3 + $0x48] sm:$0xff]  ;;  %v100_v9 = vld [vmem:[%s3287_s3 + $0x40] sm:$0xff]  ;;  %v95_v10 = vld [vmem:[%s3287_s3 + $0x18] sm:$0xff]  ;;  %v2539_v59 = vand.u32 127, %v60_v58  ;;  %s2029_s1 = sld [smem:[#allocation5 + $0x1]]  ;;  %s2010_s19 = sshll.u32 %s3293_s9, 4  ;;  %s2011_s19 = int_to_ptr.hbm [resolvable:$true] %s2010_s19 }
  0x11   :  { %2118 = vset.pattern.permute.xlu2 %v2387_v3  ;;  %v94_v11 = vld [vmem:[%s3287_s3 + $0x10] sm:$0xff]  ;;  %v93_v12 = vld [vmem:[%s3287_s3 + $0x8] sm:$0xff]  ;;  %v92_v13 = vld [vmem:[%s3287_s3] sm:$0xff]  ;;  %s325_s3 = sld [smem:[#allocation5]] }
  0x12   :  { %244 = vperm.xlu2 %2118, %v102_v4   ;;  %v91_v14 = vld [vmem:[%s3286_s2] sm:$0x7]  ;;  %s2389_s2 = smov 126   ;;  %v62_v63 = vadd.s32 128, %v2539_v59  ;;  %s2030_s21 = sld [smem:[#allocation8 + $0x1]] }
  0x13   :  { %v2490_v15 = vperm.slane %v91_v14, 0  ;;  %v2492_v16 = vperm.slane %v91_v14, 1  ;;  %v157_v17 = vperm.slane %v91_v14, 2  ;;  %s2051_s22 = sld [smem:[#allocation5 + $0x2]] }
  0x14   :  { %v2543_v1 = vand.u32 127, %v62_v63  ;;  %s2052_s23 = sld [smem:[#allocation8 + $0x2]] }
  0x17   :  { %v326_v4 = vstv %s325_s3 }
  0x18   :  { %149 = vperm.xlu0 %2116, %v98_v5   ;;  %144 = vperm.xlu1 %2117, %v97_v6   ;;  %vm2550_vm2 = vcmp.lt.s32.totalorder %v2543_v1, %v326_v4  ;;  %vm2558_vm3 = vcmp.lt.s32.totalorder %v2539_v59, %v326_v4 }
  0x1a   :  { %139 = vperm.xlu2 %2118, %v96_v7  }
  0x20   :  { %239 = vperm.xlu0 %2116, %v101_v8   ;;  %234 = vperm.xlu1 %2117, %v100_v9  }
  0x22   :  { %121 = vperm.xlu2 %2118, %v95_v10  }
  0x28   :  { %116 = vperm.xlu0 %2116, %v94_v11   ;;  %111 = vperm.xlu1 %2117, %v93_v12  }
  0x2a   :  { %106 = vperm.xlu2 %2118, %v92_v13  }
  0x6c   :  { %v245_v34 = vpop.permute.xlu2 %244 }
  0x6d   :  { %v259_v35 = vmul.f32 %v245_v34, %v2492_v16  ;;  %v258_v36 = vmul.f32 %v245_v34, %v2490_v15  ;;  %v260_v37 = vmul.f32 %v245_v34, %v157_v17 }
  0x74   :  { %v140_v38 = vpop.permute.xlu2 %139 }
  0x75   :  { %v159_v39 = vmul.f32 %v140_v38, %v2490_v15  ;;  %v160_v40 = vmul.f32 %v140_v38, %v2492_v16  ;;  %v161_v41 = vmul.f32 %v157_v17, %v140_v38 }
  0x7c   :  { %v122_v50 = vpop.permute.xlu2 %121 }
  0x7d   :  { %v136_v2 = vmul.f32 %v2492_v16, %v122_v50  ;;  %v135_v5 = vmul.f32 %v2490_v15, %v122_v50 }
  0x82   :  { %v155_v18 = vpop.permute.xlu0 %154  ;;  %v250_v26 = vpop.permute.xlu1 %249 }
  0x83   :  { %v168_v19 = vmul.f32 %v155_v18, %v2490_v15  ;;  %v169_v20 = vmul.f32 %v155_v18, %v2492_v16  ;;  %v170_v21 = vmul.f32 %v157_v17, %v155_v18  ;;  %v263_v27 = vmul.f32 %v250_v26, %v157_v17 }
  0x84   :  { %v261_v28 = vmul.f32 %v250_v26, %v2490_v15  ;;  %v262_v29 = vmul.f32 %v250_v26, %v2492_v16  ;;  %v2534_v51 = vpop.permute.xlu2 %106 }
  0x85   :  { %201 = vrot.lane.b32.xlu0 %v168_v19, %s2388_s0  ;;  %205 = vrot.lane.b32.xlu2 %v170_v21, %s2388_s0  ;;  %v129_v4 = vmul.f32 %v2490_v15, %v2534_v51 }
  0x86   :  { %203 = vrot.lane.b32.xlu1 %v169_v20, %s2388_s0 }
  0x8a   :  { %v150_v22 = vpop.permute.xlu0 %149  ;;  %v145_v30 = vpop.permute.xlu1 %144 }
  0x8b   :  { %v165_v23 = vmul.f32 %v150_v22, %v2490_v15  ;;  %v166_v24 = vmul.f32 %v150_v22, %v2492_v16  ;;  %v167_v25 = vmul.f32 %v157_v17, %v150_v22  ;;  %v163_v31 = vmul.f32 %v145_v30, %v2492_v16 }
  0x8c   :  { %v162_v32 = vmul.f32 %v145_v30, %v2490_v15  ;;  %v164_v33 = vmul.f32 %v157_v17, %v145_v30 }
  0x8d   :  { %199 = vrot.lane.b32.xlu0 %v167_v25, %s2388_s0  ;;  %197 = vrot.lane.b32.xlu2 %v166_v24, %s2388_s0 }
  0x8e   :  { %195 = vrot.lane.b32.xlu1 %v165_v23, %s2388_s0 }
  0x92   :  { %v240_v42 = vpop.permute.xlu0 %239  ;;  %v235_v46 = vpop.permute.xlu1 %234 }
  0x93   :  { %v255_v43 = vmul.f32 %v240_v42, %v2490_v15  ;;  %v256_v44 = vmul.f32 %v240_v42, %v2492_v16  ;;  %v257_v45 = vmul.f32 %v240_v42, %v157_v17  ;;  %v252_v47 = vmul.f32 %v235_v46, %v2490_v15 }
  0x94   :  { %v253_v48 = vmul.f32 %v235_v46, %v2492_v16  ;;  %v254_v49 = vmul.f32 %v235_v46, %v157_v17  ;;  %v374_v17 = vstv %s341_s20 }
  0x95   :  { %298 = vrot.lane.b32.xlu0 %v263_v27, %s2389_s2  ;;  %296 = vrot.lane.b32.xlu2 %v262_v29, %s2389_s2 }
  0x96   :  { %294 = vrot.lane.b32.xlu1 %v261_v28, %s2389_s2 }
  0x9a   :  { %v117_v53 = vpop.permute.xlu0 %116  ;;  %v2536_v54 = vpop.permute.xlu1 %111 }
  0x9b   :  { %v133_v26 = vmul.f32 %v2490_v15, %v117_v53  ;;  %v134_v28 = vmul.f32 %v2492_v16, %v117_v53 }
  0x9d   :  { %191 = vrot.lane.b32.xlu0 %v163_v31, %s2388_s0  ;;  %189 = vrot.lane.b32.xlu2 %v162_v32, %s2388_s0 }
  0x9e   :  { %193 = vrot.lane.b32.xlu1 %v164_v33, %s2388_s0 }
  0xa5   :  { %290 = vrot.lane.b32.xlu0 %v259_v35, %s2389_s2  ;;  %288 = vrot.lane.b32.xlu2 %v258_v36, %s2389_s2 }
  0xa6   :  { %292 = vrot.lane.b32.xlu1 %v260_v37, %s2389_s2 }
  0xad   :  { %183 = vrot.lane.b32.xlu0 %v159_v39, %s2388_s0  ;;  %187 = vrot.lane.b32.xlu2 %v161_v41, %s2388_s0 }
  0xae   :  { %185 = vrot.lane.b32.xlu1 %v160_v40, %s2388_s0 }
  0xb5   :  { %282 = vrot.lane.b32.xlu0 %v255_v43, %s2389_s2  ;;  %286 = vrot.lane.b32.xlu2 %v257_v45, %s2389_s2 }
  0xb6   :  { %284 = vrot.lane.b32.xlu1 %v256_v44, %s2389_s2 }
  0xbd   :  { %276 = vrot.lane.b32.xlu0 %v252_v47, %s2389_s2  ;;  %280 = vrot.lane.b32.xlu2 %v254_v49, %s2389_s2  ;;  %v132_v49 = vmul.f32 %v2492_v16, %v2536_v54 }
  0xbe   :  { %278 = vrot.lane.b32.xlu1 %v253_v48, %s2389_s2  ;;  %v131_v48 = vmul.f32 %v2490_v15, %v2536_v54 }
  0xdf   :  { %v206_v52 = vpop.permute.xlu2 %205 }
  0xe7   :  { %v198_v55 = vpop.permute.xlu2 %197 }
  0xef   :  { %v297_v60 = vpop.permute.xlu2 %296 }
  0xf7   :  { %v202_v56 = vpop.permute.xlu0 %201  ;;  %v190_v9 = vpop.permute.xlu2 %189 }
  0xf8   :  { %v204_v57 = vpop.permute.xlu1 %203 }
  0xf9   :  { %v215_v0 = vsel %vm207_vm0, %v204_v57, %v206_v52  ;;  %v214_v3 = vsel %vm207_vm0, %v202_v56, %v204_v57 }
  0xfa   :  { %v231_v6 = vadd.f32 %v215_v0, %v136_v2  ;;  %v230_v8 = vadd.f32 %v214_v3, %v135_v5  ;;  %v130_v5 = vmul.f32 %v2492_v16, %v2534_v51 }
  0xff   :  { %v200_v61 = vpop.permute.xlu0 %199  ;;  %v289_v24 = vpop.permute.xlu2 %288 }
 0x100   :  { %v196_v62 = vpop.permute.xlu1 %195  ;;  %v213_v27 = vsel %vm207_vm0, %v198_v55, %v200_v61 }
 0x101   :  { %v212_v25 = vsel %vm207_vm0, %v196_v62, %v198_v55  ;;  %v229_v31 = vadd.f32 %v213_v27, %v134_v28 }
 0x102   :  { %v228_v29 = vadd.f32 %v212_v25, %v133_v26 }
 0x107   :  { %v299_v7 = vpop.permute.xlu0 %298  ;;  %v188_v38 = vpop.permute.xlu2 %187 }
 0x108   :  { %v308_v10 = vsel %vm300_vm1, %v297_v60, %v299_v7  ;;  %v295_v11 = vpop.permute.xlu1 %294 }
 0x109   :  { %v2554_v13 = vadd.f32 %v308_v10, %v231_v6  ;;  %v307_v14 = vsel %vm300_vm1, %v295_v11, %v297_v60 }
 0x10a   :  { %v2562_v18 = vadd.f32 %v307_v14, %v230_v8 }
 0x10b   :  { %v340_v19 = vsel %vm2550_vm2, %v2554_v13, 0.0 }
 0x10c   :  { %v339_v20 = vsel %vm2558_vm3, %v2562_v18, 0.0 }
 0x10d   :  { %v351_v21 = vadd.f32 %v340_v19, %v339_v20 }
 0x10f   :  { %352 = vadd.xlane.f32.xlu0 %v351_v21  ;;  %v192_v22 = vpop.permute.xlu0 %191  ;;  %v287_v50 = vpop.permute.xlu2 %286  ;;  %v360_v21 = vmul.f32 %v339_v20, %v339_v20 }
 0x110   :  { %v194_v23 = vpop.permute.xlu1 %193  ;;  %v210_v46 = vsel %vm207_vm0, %v190_v9, %v192_v22 }
 0x111   :  { %v211_v47 = vsel %vm207_vm0, %v192_v22, %v194_v23  ;;  %v226_v53 = vadd.f32 %v210_v46, %v131_v48  ;;  %v361_v22 = vmul.f32 %v340_v19, %v340_v19 }
 0x112   :  { %v227_v55 = vadd.f32 %v211_v47, %v132_v49 }
 0x113   :  { %v371_v51 = vadd.f32 %v361_v22, %v360_v21 }
 0x117   :  { %v291_v30 = vpop.permute.xlu0 %290  ;;  %v281_v7 = vpop.permute.xlu2 %280 }
 0x118   :  { %v305_v32 = vsel %vm300_vm1, %v289_v24, %v291_v30  ;;  %v293_v33 = vpop.permute.xlu1 %292 }
 0x119   :  { %v2575_v34 = vadd.f32 %v305_v32, %v228_v29  ;;  %v306_v35 = vsel %vm300_vm1, %v291_v30, %v293_v33 }
 0x11a   :  { %v2578_v36 = vadd.f32 %v306_v35, %v229_v31 }
 0x11b   :  { %v337_v37 = vsel %vm2558_vm3, %v2575_v34, 0.0 }
 0x11c   :  { %v338_v39 = vsel %vm2550_vm2, %v2578_v36, 0.0  ;;  %v358_v40 = vmul.f32 %v337_v37, %v337_v37 }
 0x11d   :  { %v348_v41 = vadd.f32 %v338_v39, %v337_v37  ;;  %v359_v42 = vmul.f32 %v338_v39, %v338_v39 }
 0x11f   :  { %349 = vadd.xlane.f32.xlu1 %v348_v41  ;;  %v184_v43 = vpop.permute.xlu0 %183  ;;  %v368_v44 = vadd.f32 %v359_v42, %v358_v40 }
 0x120   :  { %v186_v45 = vpop.permute.xlu1 %185 }
 0x121   :  { %369 = vadd.xlane.f32.xlu0 %v368_v44  ;;  %v209_v0 = vsel %vm207_vm0, %v186_v45, %v188_v38  ;;  %v208_v2 = vsel %vm207_vm0, %v184_v43, %v186_v45 }
 0x122   :  { %v225_v8 = vadd.f32 %v209_v0, %v130_v5  ;;  %v224_v9 = vadd.f32 %v208_v2, %v129_v4 }
 0x127   :  { %v283_v52 = vpop.permute.xlu0 %282 }
 0x128   :  { %v285_v56 = vpop.permute.xlu1 %284 }
 0x129   :  { %v304_v57 = vsel %vm300_vm1, %v285_v56, %v287_v50  ;;  %v303_v60 = vsel %vm300_vm1, %v283_v52, %v285_v56 }
 0x12a   :  { %v2594_v61 = vadd.f32 %v304_v57, %v227_v55  ;;  %v2596_v62 = vadd.f32 %v303_v60, %v226_v53  ;;  %v397_v55 = vld [vmem:[%s3289_s5 + $0x10] sm:$0xff] }
 0x12c   :  { %v335_v63 = vsel %vm2558_vm3, %v2596_v62, 0.0  ;;  %v336_v54 = vsel %vm2550_vm2, %v2594_v61, 0.0 }
 0x12d   :  { %v345_v3 = vadd.f32 %v336_v54, %v335_v63  ;;  %v356_v19 = vmul.f32 %v335_v63, %v335_v63  ;;  %v357_v28 = vmul.f32 %v336_v54, %v336_v54 }
 0x12f   :  { %346 = vadd.xlane.f32.xlu2 %v345_v3  ;;  %v277_v6 = vpop.permute.xlu0 %276  ;;  %v365_v29 = vadd.f32 %v357_v28, %v356_v19 }
 0x130   :  { %v279_v10 = vpop.permute.xlu1 %278 }
 0x131   :  { %v302_v11 = vsel %vm300_vm1, %v279_v10, %v281_v7  ;;  %v301_v14 = vsel %vm300_vm1, %v277_v6, %v279_v10 }
 0x132   :  { %v2612_v23 = vadd.f32 %v302_v11, %v225_v8  ;;  %v2614_v24 = vadd.f32 %v301_v14, %v224_v9 }
 0x134   :  { %v333_v15 = vsel %vm2558_vm3, %v2614_v24, 0.0  ;;  %v334_v16 = vsel %vm2550_vm2, %v2612_v23, 0.0  ;;  %vm719_vm2 = vcmask 785408  }
 0x135   :  { %v342_v25 = vadd.f32 %v334_v16, %v333_v15  ;;  %v354_v26 = vmul.f32 %v333_v15, %v333_v15  ;;  %v355_v27 = vmul.f32 %v334_v16, %v334_v16 }
 0x137   :  { %372 = vadd.xlane.f32.xlu2 %v371_v51  ;;  %343 = vadd.xlane.f32.xlu1 %v342_v25  ;;  %v362_v20 = vadd.f32 %v355_v27, %v354_v26 }
 0x139   :  { %363 = vadd.xlane.f32.xlu0 %v362_v20 }
 0x13f   :  { %366 = vadd.xlane.f32.xlu2 %v365_v29 }
 0x182   :  { %v353_v30 = vpop.xlane.xlu0 %352 }
 0x183   :  { %v2626_v44 = vmul.f32 %v374_v17, %v353_v30 }
 0x185   :  { %v386_v49 = vmul.f32 %v2626_v44, %v2626_v44 }
 0x192   :  { %v350_v31 = vpop.xlane.xlu1 %349 }
 0x193   :  { %v2622_v32 = vmul.f32 %v374_v17, %v350_v31 }
 0x194   :  { %v370_v12 = vpop.xlane.xlu0 %369 }
 0x195   :  { %v385_v33 = vmul.f32 %v2622_v32, %v2622_v32  ;;  %v381_v35 = vmul.f32 %v374_v17, %v370_v12 }
 0x197   :  { %v389_v37 = vsub.f32 %v381_v35, %v385_v33  ;;  %v395_v35 = vld [vmem:[%s3289_s5] sm:$0xff] }
 0x199   :  { %v393_v38 = vmax.f32 %v389_v37, 0.0 }
 0x19b   :  { %v401_v39 = vadd.f32 1e-05, %v393_v38 }
 0x19d   :  { %2299 = vrsqrt.f32 %v401_v39  ;;  %vm429_vm5 = vweird.f32 %v401_v39 }
 0x1a2   :  { %v347_v40 = vpop.xlane.xlu2 %346 }
 0x1a3   :  { %v2300_v41 = vpop.eup %2299  ;;  %v2637_v0 = vmul.f32 %v374_v17, %v347_v40 }
 0x1a4   :  { %v424_v42 = vmul.f32 %v2300_v41, %v401_v39  ;;  %vm430_vm4 = vweird.f32 %v2300_v41 }
 0x1a5   :  { %vm431_vm6 = vmor %vm429_vm5, %vm430_vm4  ;;  %v384_v8 = vmul.f32 %v2637_v0, %v2637_v0 }
 0x1a6   :  { %v425_v43 = vmul.f32 %v2300_v41, %v424_v42 }
 0x1a8   :  { %v426_v45 = vmul.f32 0.5, %v425_v43 }
 0x1aa   :  { %v427_v46 = vsub.f32 1.5, %v426_v45  ;;  %v373_v47 = vpop.xlane.xlu2 %372  ;;  %v344_v48 = vpop.xlane.xlu1 %343 }
 0x1ab   :  { %v382_v50 = vmul.f32 %v374_v17, %v373_v47  ;;  %v2630_v52 = vmul.f32 %v374_v17, %v344_v48  ;;  %v396_v47 = vld [vmem:[%s3289_s5 + $0x8] sm:$0xff] }
 0x1ac   :  { %v364_v53 = vpop.xlane.xlu0 %363  ;;  %v428_v56 = vmul.f32 %v2300_v41, %v427_v46 }
 0x1ad   :  { %v390_v57 = vsub.f32 %v382_v50, %v386_v49  ;;  %v383_v60 = vmul.f32 %v2630_v52, %v2630_v52  ;;  %v379_v63 = vmul.f32 %v374_v17, %v364_v53 }
 0x1ae   :  { %v432_v54 = vsel %vm431_vm6, %v2300_v41, %v428_v56  ;;  %v450_v41 = vld [vmem:[%s3290_s6 + $0x18] sm:$0xff] }
 0x1af   :  { %v394_v2 = vmax.f32 %v390_v57, 0.0  ;;  %v387_v3 = vsub.f32 %v379_v63, %v383_v60  ;;  %v445_v4 = vmul.f32 %v432_v54, %v397_v55  ;;  %v448_v57 = vld [vmem:[%s3290_s6 + $0x8] sm:$0xff] }
 0x1b1   :  { %v402_v5 = vadd.f32 1e-05, %v394_v2  ;;  %v391_v6 = vmax.f32 %v387_v3, 0.0  ;;  %471 = vperm.xlu2 %2118, %v445_v4   ;;  %v453_v53 = vmul.f32 %v445_v4, %v2622_v32  ;;  %v447_v32 = vld [vmem:[%s3290_s6] sm:$0xff] }
 0x1b2   :  { %v367_v7 = vpop.xlane.xlu2 %366 }
 0x1b3   :  { %2301 = vrsqrt.f32 %v402_v5  ;;  %v399_v9 = vadd.f32 1e-05, %v391_v6  ;;  %v380_v10 = vmul.f32 %v374_v17, %v367_v7  ;;  %vm439_vm8 = vweird.f32 %v402_v5  ;;  %v398_v17 = vld [vmem:[%s3289_s5 + $0x18] sm:$0xff] }
 0x1b5   :  { %2303 = vrsqrt.f32 %v399_v9  ;;  %v388_v11 = vsub.f32 %v380_v10, %v384_v8  ;;  %vm409_vm11 = vweird.f32 %v399_v9 }
 0x1b7   :  { %v392_v14 = vmax.f32 %v388_v11, 0.0 }
 0x1b9   :  { %v2302_v21 = vpop.eup %2301  ;;  %v400_v22 = vadd.f32 1e-05, %v392_v14 }
 0x1ba   :  { %v434_v15 = vmul.f32 %v2302_v21, %v402_v5  ;;  %vm440_vm7 = vweird.f32 %v2302_v21 }
 0x1bb   :  { %v2304_v16 = vpop.eup %2303  ;;  %2305 = vrsqrt.f32 %v400_v22  ;;  %vm441_vm10 = vmor %vm439_vm8, %vm440_vm7  ;;  %vm419_vm14 = vweird.f32 %v400_v22 }
 0x1bc   :  { %v435_v51 = vmul.f32 %v2302_v21, %v434_v15  ;;  %v404_v25 = vmul.f32 %v2304_v16, %v399_v9  ;;  %vm410_vm9 = vweird.f32 %v2304_v16 }
 0x1bd   :  { %vm411_vm12 = vmor %vm409_vm11, %vm410_vm9 }
 0x1be   :  { %v436_v26 = vmul.f32 0.5, %v435_v51  ;;  %v405_v27 = vmul.f32 %v2304_v16, %v404_v25 }
 0x1c0   :  { %v437_v20 = vsub.f32 1.5, %v436_v26  ;;  %v406_v19 = vmul.f32 0.5, %v405_v27  ;;  %v2390_v27 = vmov 0.0  }
 0x1c1   :  { %v2306_v28 = vpop.eup %2305 }
 0x1c2   :  { %v407_v29 = vsub.f32 1.5, %v406_v19  ;;  %v414_v30 = vmul.f32 %v2306_v28, %v400_v22  ;;  %v438_v31 = vmul.f32 %v2302_v21, %v437_v20  ;;  %vm420_vm13 = vweird.f32 %v2306_v28 }
 0x1c3   :  { %vm421_vm15 = vmor %vm419_vm14, %vm420_vm13 }
 0x1c4   :  { %v415_v12 = vmul.f32 %v2306_v28, %v414_v30  ;;  %v442_v33 = vsel %vm441_vm10, %v2302_v21, %v438_v31  ;;  %v408_v37 = vmul.f32 %v2304_v16, %v407_v29 }
 0x1c5   :  { %v446_v38 = vmul.f32 %v442_v33, %v398_v17 }
 0x1c6   :  { %v416_v39 = vmul.f32 0.5, %v415_v12  ;;  %v412_v40 = vsel %vm411_vm12, %v2304_v16, %v408_v37 }
 0x1c7   :  { %476 = vperm.xlu1 %2117, %v446_v38   ;;  %v443_v42 = vmul.f32 %v412_v40, %v395_v35  ;;  %v454_v43 = vmul.f32 %v446_v38, %v2626_v44  ;;  %v449_v44 = vld [vmem:[%s3290_s6 + $0x10] sm:$0xff] }
 0x1c8   :  { %v417_v45 = vsub.f32 1.5, %v416_v39  ;;  %v457_v55 = vsub.f32 %v449_v44, %v453_v53 }
 0x1c9   :  { %461 = vperm.xlu2 %2118, %v443_v42   ;;  %v458_v46 = vsub.f32 %v450_v41, %v454_v43  ;;  %v451_v63 = vmul.f32 %v443_v42, %v2630_v52 }
 0x1ca   :  { %v418_v48 = vmul.f32 %v2306_v28, %v417_v45 }
 0x1cb   :  { %504 = vperm.xlu0 %2116, %v458_v46   ;;  %v455_v54 = vsub.f32 %v447_v32, %v451_v63 }
 0x1cc   :  { %v422_v49 = vsel %vm421_vm15, %v2306_v28, %v418_v48 }
 0x1cd   :  { %v444_v50 = vmul.f32 %v422_v49, %v396_v47 }
 0x1cf   :  { %466 = vperm.xlu1 %2117, %v444_v50   ;;  %v452_v56 = vmul.f32 %v444_v50, %v2637_v0 }
 0x1d1   :  { %v456_v60 = vsub.f32 %v448_v57, %v452_v56 }
 0x1d3   :  { %499 = vperm.xlu0 %2116, %v457_v55  }
 0x1d7   :  { %494 = vperm.xlu1 %2117, %v456_v60  }
 0x1db   :  { %489 = vperm.xlu0 %2116, %v455_v54  }
 0x20b   :  { %v472_v8 = vpop.permute.xlu2 %471 }
 0x223   :  { %v462_v25 = vpop.permute.xlu2 %461 }
 0x224   :  { %v480_v19 = vmul.f32 %v462_v25, %v2612_v23 }
 0x239   :  { %v477_v2 = vpop.permute.xlu1 %476 }
 0x23a   :  { %v485_v3 = vmul.f32 %v477_v2, %v2562_v18  ;;  %v486_v0 = vmul.f32 %v477_v2, %v2554_v13  ;;  %v483_v18 = vmul.f32 %v472_v8, %v2575_v34  ;;  %v484_v13 = vmul.f32 %v472_v8, %v2578_v36 }
 0x23d   :  { %v505_v4 = vpop.permute.xlu0 %504 }
 0x23e   :  { %v2668_v5 = vadd.f32 %v505_v4, %v485_v3  ;;  %v2670_v6 = vadd.f32 %v505_v4, %v486_v0 }
 0x240   :  { %v521_v7 = vmax.f32 %v2668_v5, 0.0  ;;  %v522_v52 = vmax.f32 %v2670_v6, 0.0  ;;  %v692_v5 = vld [vmem:[%s3288_s4 + $0x8] sm:$0xff]  ;;  %v693_v6 = vld [vmem:[%s3288_s4 + $0x10] sm:$0xff] }
 0x241   :  { %v467_v9 = vpop.permute.xlu1 %466 }
 0x242   :  { %v2119_v10 = vpack.i.bf16 %v522_v52, %v521_v7  ;;  %v481_v22 = vmul.f32 %v467_v9, %v2596_v62  ;;  %v482_v15 = vmul.f32 %v467_v9, %v2594_v61  ;;  %v479_v61 = vmul.f32 %v462_v25, %v2614_v24 }
 0x244   :  { %2120 = vrot.lane.b32.xlu2 %v2119_v10, %s2389_s2 }
 0x245   :  { %v500_v11 = vpop.permute.xlu0 %499 }
 0x246   :  { %v2681_v14 = vadd.f32 %v500_v11, %v483_v18  ;;  %v2683_v21 = vadd.f32 %v500_v11, %v484_v13 }
 0x248   :  { %v519_v16 = vmax.f32 %v2681_v14, 0.0  ;;  %v520_v51 = vmax.f32 %v2683_v21, 0.0  ;;  %v791_v21 = vstv %s2029_s1 }
 0x249   :  { %v495_v26 = vpop.permute.xlu1 %494  ;;  %vm2785_vm3 = vcmp.lt.s32.totalorder %v2539_v59, %v791_v21  ;;  %vm2795_vm4 = vcmp.lt.s32.totalorder %v2543_v1, %v791_v21 }
 0x24a   :  { %v2689_v34 = vadd.f32 %v495_v26, %v481_v22  ;;  %v2691_v36 = vadd.f32 %v495_v26, %v482_v15  ;;  %v2124_v20 = vpack.i.bf16 %v519_v16, %v2390_v27  ;;  %v2129_v62 = vpack.i.bf16 0.0, %v520_v51 }
 0x24c   :  { %v517_v28 = vmax.f32 %v2689_v34, 0.0  ;;  %v518_v29 = vmax.f32 %v2691_v36, 0.0  ;;  %2125 = vrot.lane.b32.xlu1 %v2124_v20, %s2389_s2  ;;  %2130 = vrot.lane.b32.xlu0 %v2129_v62, %s2389_s2 }
 0x24d   :  { %v490_v30 = vpop.permute.xlu0 %489 }
 0x24e   :  { %v2704_v17 = vadd.f32 %v490_v30, %v479_v61  ;;  %v2706_v31 = vadd.f32 %v490_v30, %v480_v19  ;;  %v2134_v24 = vpack.i.bf16 %v518_v29, %v517_v28 }
 0x250   :  { %v515_v23 = vmax.f32 %v2704_v17, 0.0  ;;  %v516_v12 = vmax.f32 %v2706_v31, 0.0  ;;  %2135 = vrot.lane.b32.xlu2 %v2134_v24, %s2389_s2 }
 0x252   :  { %v2144_v33 = vpack.i.bf16 0.0, %v516_v12  ;;  %v2139_v35 = vpack.i.bf16 %v515_v23, %v2390_v27 }
 0x254   :  { %2145 = vrot.lane.b32.xlu0 %v2144_v33, %s2389_s2  ;;  %2140 = vrot.lane.b32.xlu1 %v2139_v35, %s2389_s2 }
 0x258   :  { %2150 = vrot.lane.b32.xlu2 %v2119_v10, %s2388_s0 }
 0x25c   :  { %2160 = vrot.lane.b32.xlu0 %v2129_v62, %s2388_s0  ;;  %2155 = vrot.lane.b32.xlu1 %v2124_v20, %s2388_s0 }
 0x260   :  { %2165 = vrot.lane.b32.xlu2 %v2134_v24, %s2388_s0 }
 0x264   :  { %2175 = vrot.lane.b32.xlu0 %v2144_v33, %s2388_s0  ;;  %2170 = vrot.lane.b32.xlu1 %v2139_v35, %s2388_s0 }
 0x29e   :  { %v2121_v37 = vpop.permute.xlu2 %2120 }
 0x29f   :  { %v2123_v38 = vunpack.i.h.bf16 %v2121_v37  ;;  %v2122_v39 = vunpack.i.l.bf16 %v2121_v37 }
 0x2a1   :  { %v673_v40 = vsel %vm300_vm1, %v2122_v39, %v2123_v38 }
 0x2a2   :  { %736 = vmatpush.msra.mxu0 %v673_v40 }
 0x2aa   :  { %v2136_v41 = vpop.permute.xlu2 %2135 }
 0x2ab   :  { %v2138_v42 = vunpack.i.h.bf16 %v2136_v41  ;;  %v2137_v43 = vunpack.i.l.bf16 %v2136_v41 }
 0x2ad   :  { %v669_v56 = vsel %vm300_vm1, %v2137_v43, %v2138_v42 }
 0x2b2   :  { %v2151_v53 = vpop.permute.xlu2 %2150 }
 0x2b3   :  { %v2153_v60 = vunpack.i.h.bf16 %v2151_v53  ;;  %v2152_v63 = vunpack.i.l.bf16 %v2151_v53 }
 0x2b5   :  { %v601_v18 = vsel %vm207_vm0, %v2152_v63, %v2153_v60 }
 0x2ba   :  { %v2166_v10 = vpop.permute.xlu2 %2165 }
 0x2bb   :  { %v2168_v11 = vunpack.i.h.bf16 %v2166_v10  ;;  %v2167_v22 = vunpack.i.l.bf16 %v2166_v10 }
 0x2bd   :  { %v597_v24 = vsel %vm207_vm0, %v2167_v22, %v2168_v11 }
 0x2be   :  { %v2131_v45 = vpop.permute.xlu0 %2130  ;;  %v2126_v46 = vpop.permute.xlu1 %2125 }
 0x2bf   :  { %v2133_v47 = vunpack.i.h.bf16 %v2131_v45  ;;  %v2132_v48 = vunpack.i.l.bf16 %v2131_v45  ;;  %v2128_v49 = vunpack.i.h.bf16 %v2126_v46  ;;  %v2127_v50 = vunpack.i.l.bf16 %v2126_v46  ;;  %v691_v46 = vld [vmem:[%s3288_s4] sm:$0xff] }
 0x2c1   :  { %v671_v44 = vsel %vm300_vm1, %v2128_v49, %v2132_v48  ;;  %v674_v55 = vsel %vm300_vm1, %v2123_v38, %v2127_v50  ;;  %v672_v57 = vsel %vm300_vm1, %v2132_v48, %v2133_v47 }
 0x2c2   :  { %737 = vmatpush.msra.mxu0 %v671_v44  ;;  %765 = vmatpush.msra.mxu1 %v674_v55 }
 0x2c4   :  { %738 = vmatpush.msra.mxu0 %v669_v56  ;;  %766 = vmatpush.msra.mxu1 %v672_v57 }
 0x2c6   :  { %v2146_v32 = vpop.permute.xlu0 %2145  ;;  %v2141_v54 = vpop.permute.xlu1 %2140 }
 0x2c7   :  { %v2148_v2 = vunpack.i.h.bf16 %v2146_v32  ;;  %v2147_v3 = vunpack.i.l.bf16 %v2146_v32  ;;  %v2143_v0 = vunpack.i.h.bf16 %v2141_v54  ;;  %v2142_v4 = vunpack.i.l.bf16 %v2141_v54 }
 0x2c9   :  { %v667_v8 = vsel %vm300_vm1, %v2143_v0, %v2147_v3  ;;  %v670_v9 = vsel %vm300_vm1, %v2138_v42, %v2142_v4  ;;  %v668_v13 = vsel %vm300_vm1, %v2147_v3, %v2148_v2 }
 0x2ca   :  { %739 = vmatpush.msra.mxu0 %v667_v8  ;;  %767 = vmatpush.msra.mxu1 %v670_v9 }
 0x2cc   :  { %740 = vmatpush.msra.mxu0 %v601_v18  ;;  %768 = vmatpush.msra.mxu1 %v668_v13 }
 0x2ce   :  { %v2161_v15 = vpop.permute.xlu0 %2160  ;;  %v2156_v25 = vpop.permute.xlu1 %2155 }
 0x2cf   :  { %v2163_v26 = vunpack.i.h.bf16 %v2161_v15  ;;  %v2162_v20 = vunpack.i.l.bf16 %v2161_v15  ;;  %v2158_v62 = vunpack.i.h.bf16 %v2156_v25  ;;  %v2157_v61 = vunpack.i.l.bf16 %v2156_v25 }
 0x2d0   :  { %v839_v15 = vstv %s2030_s21 }
 0x2d1   :  { %v599_v19 = vsel %vm207_vm0, %v2158_v62, %v2162_v20  ;;  %v602_v30 = vsel %vm207_vm0, %v2153_v60, %v2157_v61  ;;  %v600_v33 = vsel %vm207_vm0, %v2162_v20, %v2163_v26 }
 0x2d2   :  { %741 = vmatpush.msra.mxu0 %v599_v19  ;;  %769 = vmatpush.msra.mxu1 %v602_v30 }
 0x2d4   :  { %742 = vmatpush.msra.mxu0 %v597_v24  ;;  %770 = vmatpush.msra.mxu1 %v600_v33 }
 0x2d6   :  { %v2176_v35 = vpop.permute.xlu0 %2175  ;;  %v2171_v37 = vpop.permute.xlu1 %2170 }
 0x2d7   :  { %v2178_v38 = vunpack.i.h.bf16 %v2176_v35  ;;  %v2177_v39 = vunpack.i.l.bf16 %v2176_v35  ;;  %v2173_v40 = vunpack.i.h.bf16 %v2171_v37  ;;  %v2172_v41 = vunpack.i.l.bf16 %v2171_v37 }
 0x2d9   :  { %v595_v42 = vsel %vm207_vm0, %v2173_v40, %v2177_v39  ;;  %v598_v43 = vsel %vm207_vm0, %v2168_v11, %v2172_v41  ;;  %v596_v45 = vsel %vm207_vm0, %v2177_v39, %v2178_v38 }
 0x2da   :  { %743 = vmatpush.msra.mxu0 %v595_v42  ;;  %771 = vmatpush.msra.mxu1 %v598_v43 }
 0x2dc   :  { %744 = vmatpush.msra.mxu0 %v521_v7  ;;  %772 = vmatpush.msra.mxu1 %v596_v45  ;;  %v694_v7 = vld [vmem:[%s3288_s4 + $0x18] sm:$0xff] }
 0x2de   :  { %745 = vmatpush.msra.mxu0 %v519_v16  ;;  %773 = vmatpush.msra.mxu1 %v522_v52 }
 0x2e0   :  { %746 = vmatpush.msra.mxu0 %v517_v28  ;;  %774 = vmatpush.msra.mxu1 %v520_v51 }
 0x2e2   :  { %747 = vmatpush.msra.mxu0 %v515_v23  ;;  %775 = vmatpush.msra.mxu1 %v518_v29 }
 0x2e3   :  { %2021 = vmatmul.msk.f32.vlgmr.msra.gmra.mxu0 %vm719_vm2, %v691_v46 }
 0x2e4   :  { %776 = vmatpush.msra.mxu1 %v516_v12 }
 0x2e5   :  { %2025 = vmatmul.msk.f32.vlgmr.msra.gmra.mxu1 %vm719_vm2, %v691_v46 }
 0x2eb   :  { %2022 = vmatmul.msk.f32.gmra.mxu0 %vm719_vm2, %v692_v5 }
 0x2ed   :  { %2026 = vmatmul.msk.f32.gmra.mxu1 %vm719_vm2, %v692_v5 }
 0x2f3   :  { %2023 = vmatmul.msk.f32.gmra.mxu0 %vm719_vm2, %v693_v6 }
 0x2f5   :  { %2027 = vmatmul.msk.f32.gmra.mxu1 %vm719_vm2, %v693_v6 }
 0x2fb   :  { %2024 = vmatmul.msk.f32.gmra.mxu0 %vm719_vm2, %v694_v7 }
 0x2fd   :  { %2028 = vmatmul.msk.f32.gmra.mxu1 %vm719_vm2, %v694_v7 }
 0x360   :  { %v2780_v52 = vpop.f32.mrf.mxu0 }
 0x361   :  { %v798_v54 = vsel %vm2785_vm3, %v2780_v52, 0.0 }
 0x362   :  { %v2782_v14 = vpop.f32.mrf.mxu1  ;;  %v819_v0 = vmul.f32 %v798_v54, %v798_v54 }
 0x363   :  { %v799_v2 = vsel %vm2795_vm4, %v2782_v14, 0.0 }
 0x364   :  { %v820_v4 = vmul.f32 %v799_v2, %v799_v2  ;;  %v807_v13 = vadd.f32 %v799_v2, %v798_v54 }
 0x366   :  { %v827_v10 = vadd.f32 %v820_v4, %v819_v0 }
 0x368   :  { %v2789_v51 = vpop.f32.mrf.mxu0 }
 0x369   :  { %v800_v34 = vsel %vm2785_vm3, %v2789_v51, 0.0 }
 0x36a   :  { %v2799_v28 = vpop.f32.mrf.mxu1  ;;  %v821_v8 = vmul.f32 %v800_v34, %v800_v34 }
 0x36b   :  { %v801_v29 = vsel %vm2795_vm4, %v2799_v28, 0.0 }
 0x36c   :  { %v810_v17 = vadd.f32 %v801_v29, %v800_v34  ;;  %v822_v9 = vmul.f32 %v801_v29, %v801_v29 }
 0x36e   :  { %811 = vadd.xlane.f32.xlu2 %v810_v17  ;;  %v830_v18 = vadd.f32 %v822_v9, %v821_v8 }
 0x370   :  { %v2804_v31 = vpop.f32.mrf.mxu0 }
 0x371   :  { %v802_v23 = vsel %vm2785_vm3, %v2804_v31, 0.0 }
 0x372   :  { %v2809_v12 = vpop.f32.mrf.mxu1  ;;  %v823_v49 = vmul.f32 %v802_v23, %v802_v23 }
 0x373   :  { %v803_v47 = vsel %vm2795_vm4, %v2809_v12, 0.0 }
 0x374   :  { %v813_v48 = vadd.f32 %v803_v47, %v802_v23  ;;  %v824_v50 = vmul.f32 %v803_v47, %v803_v47 }
 0x376   :  { %814 = vadd.xlane.f32.xlu1 %v813_v48  ;;  %v833_v63 = vadd.f32 %v824_v50, %v823_v49 }
 0x378   :  { %v2814_v53 = vpop.f32.mrf.mxu0 }
 0x379   :  { %v804_v44 = vsel %vm2785_vm3, %v2814_v53, 0.0 }
 0x37a   :  { %v825_v55 = vmul.f32 %v804_v44, %v804_v44  ;;  %v2819_v56 = vpop.f32.mrf.mxu1 }
 0x37b   :  { %v805_v57 = vsel %vm2795_vm4, %v2819_v56, 0.0 }
 0x37c   :  { %v826_v60 = vmul.f32 %v805_v57, %v805_v57  ;;  %v816_v32 = vadd.f32 %v805_v57, %v804_v44 }
 0x37e   :  { %834 = vadd.xlane.f32.xlu1 %v833_v63  ;;  %817 = vadd.xlane.f32.xlu2 %v816_v32  ;;  %v836_v3 = vadd.f32 %v826_v60, %v825_v55 }
 0x380   :  { %837 = vadd.xlane.f32.xlu0 %v836_v3  ;;  %v2033_v3 = vld [vmem:[%s3289_s5 + $0x30] sm:$0xff] }
 0x386   :  { %828 = vadd.xlane.f32.xlu1 %v827_v10  ;;  %831 = vadd.xlane.f32.xlu2 %v830_v18  ;;  %v2034_v10 = vld [vmem:[%s3289_s5 + $0x38] sm:$0xff] }
 0x388   :  { %808 = vadd.xlane.f32.xlu0 %v807_v13 }
 0x3e1   :  { %v812_v11 = vpop.xlane.xlu2 %811 }
 0x3e2   :  { %v2838_v39 = vmul.f32 %v839_v15, %v812_v11 }
 0x3e4   :  { %v849_v45 = vmul.f32 %v2838_v39, %v2838_v39 }
 0x3e9   :  { %v815_v22 = vpop.xlane.xlu1 %814 }
 0x3ea   :  { %v2830_v25 = vmul.f32 %v839_v15, %v815_v22 }
 0x3ec   :  { %v850_v62 = vmul.f32 %v2830_v25, %v2830_v25 }
 0x3f1   :  { %v835_v26 = vpop.xlane.xlu1 %834  ;;  %v818_v20 = vpop.xlane.xlu2 %817 }
 0x3f2   :  { %v846_v61 = vmul.f32 %v839_v15, %v835_v26  ;;  %v2834_v19 = vmul.f32 %v839_v15, %v818_v20 }
 0x3f3   :  { %v838_v30 = vpop.xlane.xlu0 %837 }
 0x3f4   :  { %v854_v24 = vsub.f32 %v846_v61, %v850_v62  ;;  %v851_v33 = vmul.f32 %v2834_v19, %v2834_v19  ;;  %v847_v35 = vmul.f32 %v839_v15, %v838_v30  ;;  %v2038_v61 = vld [vmem:[%s3290_s6 + $0x38] sm:$0xff] }
 0x3f6   :  { %v858_v37 = vmax.f32 %v854_v24, 0.0  ;;  %v855_v38 = vsub.f32 %v847_v35, %v851_v33 }
 0x3f8   :  { %v867_v40 = vadd.f32 1e-05, %v858_v37  ;;  %v859_v41 = vmax.f32 %v855_v38, 0.0  ;;  %v2037_v37 = vld [vmem:[%s3290_s6 + $0x30] sm:$0xff] }
 0x3f9   :  { %v832_v42 = vpop.xlane.xlu2 %831  ;;  %v829_v46 = vpop.xlane.xlu1 %828 }
 0x3fa   :  { %2307 = vrsqrt.f32 %v867_v40  ;;  %v868_v43 = vadd.f32 1e-05, %v859_v41  ;;  %v845_v5 = vmul.f32 %v839_v15, %v832_v42  ;;  %v844_v16 = vmul.f32 %v839_v15, %v829_v46 }
 0x3fb   :  { %v809_v6 = vpop.xlane.xlu0 %808  ;;  %vm895_vm6 = vweird.f32 %v867_v40 }
 0x3fc   :  { %2309 = vrsqrt.f32 %v868_v43  ;;  %v2842_v7 = vmul.f32 %v839_v15, %v809_v6  ;;  %v853_v21 = vsub.f32 %v845_v5, %v849_v45  ;;  %vm905_vm9 = vweird.f32 %v868_v43  ;;  %v2036_v6 = vld [vmem:[%s3290_s6 + $0x28] sm:$0xff] }
 0x3fe   :  { %v848_v34 = vmul.f32 %v2842_v7, %v2842_v7  ;;  %v857_v36 = vmax.f32 %v853_v21, 0.0 }
 0x400   :  { %v2308_v29 = vpop.eup %2307  ;;  %v852_v17 = vsub.f32 %v844_v16, %v848_v34  ;;  %v866_v47 = vadd.f32 1e-05, %v857_v36  ;;  %v2035_v34 = vld [vmem:[%s3290_s6 + $0x20] sm:$0xff] }
 0x401   :  { %v890_v23 = vmul.f32 %v2308_v29, %v867_v40  ;;  %vm896_vm5 = vweird.f32 %v2308_v29  ;;  %v2032_v40 = vld [vmem:[%s3289_s5 + $0x28] sm:$0xff] }
 0x402   :  { %v2310_v48 = vpop.eup %2309  ;;  %v856_v49 = vmax.f32 %v852_v17, 0.0  ;;  %2311 = vrsqrt.f32 %v866_v47  ;;  %vm897_vm8 = vmor %vm895_vm6, %vm896_vm5  ;;  %vm885_vm12 = vweird.f32 %v866_v47 }
 0x403   :  { %v891_v50 = vmul.f32 %v2308_v29, %v890_v23  ;;  %v900_v44 = vmul.f32 %v2310_v48, %v868_v43  ;;  %vm906_vm7 = vweird.f32 %v2310_v48 }
 0x404   :  { %v865_v55 = vadd.f32 1e-05, %v856_v49  ;;  %vm907_vm10 = vmor %vm905_vm9, %vm906_vm7 }
 0x405   :  { %v892_v57 = vmul.f32 0.5, %v891_v50  ;;  %v901_v60 = vmul.f32 %v2310_v48, %v900_v44 }
 0x406   :  { %2313 = vrsqrt.f32 %v865_v55  ;;  %vm875_vm15 = vweird.f32 %v865_v55 }
 0x407   :  { %v893_v63 = vsub.f32 1.5, %v892_v57  ;;  %v902_v32 = vmul.f32 0.5, %v901_v60 }
 0x408   :  { %v2312_v54 = vpop.eup %2311 }
 0x409   :  { %v903_v2 = vsub.f32 1.5, %v902_v32  ;;  %v894_v0 = vmul.f32 %v2308_v29, %v893_v63  ;;  %v880_v4 = vmul.f32 %v2312_v54, %v866_v47  ;;  %vm886_vm11 = vweird.f32 %v2312_v54 }
 0x40a   :  { %vm887_vm14 = vmor %vm885_vm12, %vm886_vm11 }
 0x40b   :  { %v904_v8 = vmul.f32 %v2310_v48, %v903_v2  ;;  %v898_v9 = vsel %vm897_vm8, %v2308_v29, %v894_v0  ;;  %v881_v13 = vmul.f32 %v2312_v54, %v880_v4 }
 0x40c   :  { %v2314_v18 = vpop.eup %2313  ;;  %v911_v11 = vmul.f32 %v2033_v3, %v898_v9 }
 0x40d   :  { %v870_v22 = vmul.f32 %v2314_v18, %v865_v55  ;;  %v908_v15 = vsel %vm907_vm10, %v2310_v48, %v904_v8  ;;  %v882_v26 = vmul.f32 0.5, %v881_v13  ;;  %vm876_vm13 = vweird.f32 %v2314_v18 }
 0x40e   :  { %938 = vperm.xlu2 %2118, %v911_v11   ;;  %v912_v20 = vmul.f32 %v2034_v10, %v908_v15  ;;  %v920_v33 = vmul.f32 %v911_v11, %v2830_v25  ;;  %v2031_v25 = vld [vmem:[%s3289_s5 + $0x20] sm:$0xff]  ;;  %vm877_vm3 = vmor %vm875_vm15, %vm876_vm13 }
 0x40f   :  { %v871_v62 = vmul.f32 %v2314_v18, %v870_v22  ;;  %v883_v30 = vsub.f32 1.5, %v882_v26 }
 0x410   :  { %v921_v24 = vmul.f32 %v912_v20, %v2834_v19  ;;  %v924_v19 = vsub.f32 %v2037_v37, %v920_v33 }
 0x411   :  { %v872_v35 = vmul.f32 0.5, %v871_v62  ;;  %v884_v41 = vmul.f32 %v2312_v54, %v883_v30 }
 0x412   :  { %v925_v38 = vsub.f32 %v2038_v61, %v921_v24 }
 0x413   :  { %v873_v42 = vsub.f32 1.5, %v872_v35  ;;  %v888_v43 = vsel %vm887_vm14, %v2312_v54, %v884_v41 }
 0x414   :  { %971 = vperm.xlu1 %2117, %v925_v38   ;;  %v910_v46 = vmul.f32 %v2032_v40, %v888_v43 }
 0x415   :  { %v874_v45 = vmul.f32 %v2314_v18, %v873_v42 }
 0x416   :  { %966 = vperm.xlu2 %2118, %v924_v19   ;;  %933 = vperm.xlu0 %2116, %v910_v46   ;;  %v919_v21 = vmul.f32 %v910_v46, %v2838_v39 }
 0x417   :  { %v878_v5 = vsel %vm877_vm3, %v2314_v18, %v874_v45 }
 0x418   :  { %v909_v16 = vmul.f32 %v2031_v25, %v878_v5  ;;  %v923_v29 = vsub.f32 %v2036_v6, %v919_v21 }
 0x41a   :  { %v918_v36 = vmul.f32 %v909_v16, %v2842_v7 }
 0x41c   :  { %961 = vperm.xlu1 %2117, %v923_v29   ;;  %v922_v17 = vsub.f32 %v2035_v34, %v918_v36 }
 0x41e   :  { %956 = vperm.xlu2 %2118, %v922_v17   ;;  %943 = vperm.xlu0 %2116, %v912_v20  }
 0x426   :  { %928 = vperm.xlu0 %2116, %v909_v16  }
 0x468   :  { %v939_v47 = vpop.permute.xlu2 %938 }
 0x469   :  { %v950_v13 = vmul.f32 %v939_v47, %v2804_v31  ;;  %v951_v11 = vmul.f32 %v939_v47, %v2809_v12 }
 0x470   :  { %v967_v57 = vpop.permute.xlu2 %966 }
 0x471   :  { %v2910_v22 = vadd.f32 %v967_v57, %v950_v13  ;;  %v2912_v15 = vadd.f32 %v967_v57, %v951_v11 }
 0x473   :  { %v986_v31 = vmax.f32 %v2910_v22, 0.0  ;;  %v987_v12 = vmax.f32 %v2912_v15, 0.0 }
 0x475   :  { %v2199_v62 = vpack.i.bf16 0.0, %v987_v12  ;;  %v2194_v61 = vpack.i.bf16 %v986_v31, %v2390_v27 }
 0x478   :  { %v957_v8 = vpop.permute.xlu2 %956 }
 0x486   :  { %v972_v23 = vpop.permute.xlu1 %971 }
 0x488   :  { %v934_v48 = vpop.permute.xlu0 %933 }
 0x489   :  { %v948_v49 = vmul.f32 %v934_v48, %v2789_v51  ;;  %v949_v39 = vmul.f32 %v934_v48, %v2799_v28 }
 0x48e   :  { %v962_v50 = vpop.permute.xlu1 %961 }
 0x48f   :  { %v2876_v44 = vadd.f32 %v962_v50, %v948_v49  ;;  %v2878_v55 = vadd.f32 %v962_v50, %v949_v39 }
 0x490   :  { %v944_v63 = vpop.permute.xlu0 %943 }
 0x491   :  { %v984_v7 = vmax.f32 %v2876_v44, 0.0  ;;  %v985_v60 = vmax.f32 %v2878_v55, 0.0  ;;  %v952_v32 = vmul.f32 %v944_v63, %v2814_v53  ;;  %v953_v54 = vmul.f32 %v944_v63, %v2819_v56  ;;  %v2040_v44 = vld [vmem:[%s3288_s4 + $0x28] sm:$0xff]  ;;  %v2041_v55 = vld [vmem:[%s3288_s4 + $0x30] sm:$0xff] }
 0x493   :  { %v2189_v51 = vpack.i.bf16 %v985_v60, %v984_v7  ;;  %v2888_v28 = vadd.f32 %v972_v23, %v952_v32  ;;  %v2890_v2 = vadd.f32 %v972_v23, %v953_v54 }
 0x495   :  { %2190 = vrot.lane.b32.xlu0 %v2189_v51, %s2389_s2  ;;  %v988_v3 = vmax.f32 %v2888_v28, 0.0  ;;  %v989_v0 = vmax.f32 %v2890_v2, 0.0  ;;  %v1258_v2 = vstv %s2051_s22  ;;  %s2073_s22 = sld [smem:[#allocation5 + $0x3]] }
 0x496   :  { %vm2993_vm4 = vcmp.lt.s32.totalorder %v2539_v59, %v1258_v2  ;;  %vm3003_vm5 = vcmp.lt.s32.totalorder %v2543_v1, %v1258_v2 }
 0x497   :  { %v2214_v9 = vpack.i.bf16 %v989_v0, %v988_v3 }
 0x498   :  { %v929_v4 = vpop.permute.xlu0 %928 }
 0x499   :  { %v946_v53 = vmul.f32 %v929_v4, %v2780_v52  ;;  %v947_v56 = vmul.f32 %v929_v4, %v2782_v14 }
 0x49b   :  { %v2901_v10 = vadd.f32 %v957_v8, %v946_v53  ;;  %v2903_v18 = vadd.f32 %v957_v8, %v947_v56 }
 0x49d   :  { %2215 = vrot.lane.b32.xlu0 %v2214_v9, %s2389_s2  ;;  %v982_v52 = vmax.f32 %v2901_v10, 0.0  ;;  %v983_v14 = vmax.f32 %v2903_v18, 0.0 }
 0x49f   :  { %v2184_v26 = vpack.i.bf16 0.0, %v983_v14  ;;  %v2179_v20 = vpack.i.bf16 %v982_v52, %v2390_v27 }
 0x4a1   :  { %2185 = vrot.lane.b32.xlu2 %v2184_v26, %s2389_s2  ;;  %2180 = vrot.lane.b32.xlu1 %v2179_v20, %s2389_s2 }
 0x4a5   :  { %2220 = vrot.lane.b32.xlu0 %v2214_v9, %s2388_s0 }
 0x4a9   :  { %2200 = vrot.lane.b32.xlu2 %v2199_v62, %s2389_s2  ;;  %2195 = vrot.lane.b32.xlu1 %v2194_v61, %s2389_s2 }
 0x4ad   :  { %2225 = vrot.lane.b32.xlu0 %v2189_v51, %s2388_s0 }
 0x4b1   :  { %2210 = vrot.lane.b32.xlu2 %v2199_v62, %s2388_s0  ;;  %2205 = vrot.lane.b32.xlu1 %v2194_v61, %s2388_s0 }
 0x4b9   :  { %2235 = vrot.lane.b32.xlu2 %v2184_v26, %s2388_s0  ;;  %2230 = vrot.lane.b32.xlu1 %v2179_v20, %s2388_s0 }
 0x4fb   :  { %v2186_v24 = vpop.permute.xlu2 %2185 }
 0x4fc   :  { %v2188_v29 = vunpack.i.h.bf16 %v2186_v24  ;;  %v2187_v17 = vunpack.i.l.bf16 %v2186_v24 }
 0x4fe   :  { %v1135_v53 = vsel %vm300_vm1, %v2187_v17, %v2188_v29 }
 0x503   :  { %v2201_v41 = vpop.permute.xlu2 %2200 }
 0x504   :  { %v2203_v19 = vunpack.i.h.bf16 %v2201_v41  ;;  %v2202_v43 = vunpack.i.l.bf16 %v2201_v41 }
 0x506   :  { %v1139_v39 = vsel %vm300_vm1, %v2202_v43, %v2203_v19 }
 0x507   :  { %v2191_v30 = vpop.permute.xlu0 %2190 }
 0x508   :  { %v2193_v45 = vunpack.i.h.bf16 %v2191_v30  ;;  %v2192_v46 = vunpack.i.l.bf16 %v2191_v30 }
 0x50a   :  { %v1136_v49 = vsel %vm300_vm1, %v2192_v46, %v2193_v45 }
 0x50b   :  { %v2211_v23 = vpop.permute.xlu2 %2210 }
 0x50c   :  { %v2213_v32 = vunpack.i.h.bf16 %v2211_v23  ;;  %v2212_v54 = vunpack.i.l.bf16 %v2211_v23 }
 0x50e   :  { %v1067_v62 = vsel %vm207_vm0, %v2212_v54, %v2213_v32 }
 0x50f   :  { %v2216_v33 = vpop.permute.xlu0 %2215 }
 0x510   :  { %v2218_v35 = vunpack.i.h.bf16 %v2216_v33  ;;  %v2217_v37 = vunpack.i.l.bf16 %v2216_v33 }
 0x512   :  { %v1140_v38 = vsel %vm300_vm1, %v2217_v37, %v2218_v35 }
 0x513   :  { %1203 = vmatpush.msra.mxu2 %v1140_v38  ;;  %v2181_v40 = vpop.permute.xlu1 %2180  ;;  %v2236_v61 = vpop.permute.xlu2 %2235 }
 0x514   :  { %v2183_v21 = vunpack.i.h.bf16 %v2181_v40  ;;  %v2182_v16 = vunpack.i.l.bf16 %v2181_v40  ;;  %v2238_v24 = vunpack.i.h.bf16 %v2236_v61  ;;  %v2237_v33 = vunpack.i.l.bf16 %v2236_v61 }
 0x516   :  { %v1134_v57 = vsel %vm300_vm1, %v2183_v21, %v2187_v17  ;;  %v1137_v63 = vsel %vm300_vm1, %v2193_v45, %v2182_v16  ;;  %v1063_v41 = vsel %vm207_vm0, %v2237_v33, %v2238_v24 }
 0x517   :  { %v2221_v42 = vpop.permute.xlu0 %2220 }
 0x518   :  { %v2223_v47 = vunpack.i.h.bf16 %v2221_v42  ;;  %v2222_v48 = vunpack.i.l.bf16 %v2221_v42  ;;  %v2039_v42 = vld [vmem:[%s3288_s4 + $0x20] sm:$0xff] }
 0x51a   :  { %v1068_v4 = vsel %vm207_vm0, %v2222_v48, %v2223_v47 }
 0x51b   :  { %v2196_v25 = vpop.permute.xlu1 %2195 }
 0x51c   :  { %v2198_v5 = vunpack.i.h.bf16 %v2196_v25  ;;  %v2197_v6 = vunpack.i.l.bf16 %v2196_v25 }
 0x51e   :  { %v1138_v34 = vsel %vm300_vm1, %v2198_v5, %v2202_v43  ;;  %v1141_v36 = vsel %vm300_vm1, %v2218_v35, %v2197_v6 }
 0x51f   :  { %1204 = vmatpush.msra.mxu2 %v1138_v34  ;;  %1232 = vmatpush.msra.mxu3 %v1141_v36  ;;  %v2226_v50 = vpop.permute.xlu0 %2225 }
 0x520   :  { %v2228_v56 = vunpack.i.h.bf16 %v2226_v50  ;;  %v2227_v8 = vunpack.i.l.bf16 %v2226_v50 }
 0x521   :  { %1205 = vmatpush.msra.mxu2 %v1136_v49  ;;  %1233 = vmatpush.msra.mxu3 %v1139_v39 }
 0x522   :  { %v1064_v20 = vsel %vm207_vm0, %v2227_v8, %v2228_v56 }
 0x523   :  { %v2206_v51 = vpop.permute.xlu1 %2205  ;;  %1206 = vmatpush.msra.mxu2 %v1134_v57  ;;  %1234 = vmatpush.msra.mxu3 %v1137_v63 }
 0x524   :  { %v2208_v9 = vunpack.i.h.bf16 %v2206_v51  ;;  %v2207_v13 = vunpack.i.l.bf16 %v2206_v51 }
 0x525   :  { %1207 = vmatpush.msra.mxu2 %v1068_v4  ;;  %1235 = vmatpush.msra.mxu3 %v1135_v53  ;;  %v1306_v4 = vstv %s2052_s23 }
 0x526   :  { %v1066_v11 = vsel %vm207_vm0, %v2208_v9, %v2212_v54  ;;  %v1069_v26 = vsel %vm207_vm0, %v2223_v47, %v2207_v13 }
 0x527   :  { %1208 = vmatpush.msra.mxu2 %v1066_v11  ;;  %1236 = vmatpush.msra.mxu3 %v1069_v26 }
 0x529   :  { %1209 = vmatpush.msra.mxu2 %v1064_v20  ;;  %1237 = vmatpush.msra.mxu3 %v1067_v62 }
 0x52b   :  { %v2231_v30 = vpop.permute.xlu1 %2230 }
 0x52c   :  { %v2233_v35 = vunpack.i.h.bf16 %v2231_v30  ;;  %v2232_v37 = vunpack.i.l.bf16 %v2231_v30 }
 0x52e   :  { %v1062_v38 = vsel %vm207_vm0, %v2233_v35, %v2237_v33  ;;  %v1065_v40 = vsel %vm207_vm0, %v2228_v56, %v2232_v37 }
 0x52f   :  { %1210 = vmatpush.msra.mxu2 %v1062_v38  ;;  %1238 = vmatpush.msra.mxu3 %v1065_v40 }
 0x531   :  { %1211 = vmatpush.msra.mxu2 %v988_v3  ;;  %1239 = vmatpush.msra.mxu3 %v1063_v41 }
 0x533   :  { %1212 = vmatpush.msra.mxu2 %v986_v31  ;;  %1240 = vmatpush.msra.mxu3 %v989_v0 }
 0x535   :  { %1213 = vmatpush.msra.mxu2 %v984_v7  ;;  %1241 = vmatpush.msra.mxu3 %v987_v12  ;;  %v2042_v7 = vld [vmem:[%s3288_s4 + $0x38] sm:$0xff] }
 0x537   :  { %1214 = vmatpush.msra.mxu2 %v982_v52  ;;  %1242 = vmatpush.msra.mxu3 %v985_v60 }
 0x538   :  { %2043 = vmatmul.msk.f32.vlgmr.msra.gmra.mxu2 %vm719_vm2, %v2039_v42 }
 0x539   :  { %1243 = vmatpush.msra.mxu3 %v983_v14 }
 0x53a   :  { %2047 = vmatmul.msk.f32.vlgmr.msra.gmra.mxu3 %vm719_vm2, %v2039_v42 }
 0x540   :  { %2044 = vmatmul.msk.f32.gmra.mxu2 %vm719_vm2, %v2040_v44 }
 0x542   :  { %2048 = vmatmul.msk.f32.gmra.mxu3 %vm719_vm2, %v2040_v44 }
 0x548   :  { %2045 = vmatmul.msk.f32.gmra.mxu2 %vm719_vm2, %v2041_v55 }
 0x54a   :  { %2049 = vmatmul.msk.f32.gmra.mxu3 %vm719_vm2, %v2041_v55 }
 0x550   :  { %2046 = vmatmul.msk.f32.gmra.mxu2 %vm719_vm2, %v2042_v7 }
 0x552   :  { %2050 = vmatmul.msk.f32.gmra.mxu3 %vm719_vm2, %v2042_v7 }
 0x5bb   :  { %v2988_v60 = vpop.f32.mrf.mxu2 }
 0x5bc   :  { %v1265_v17 = vsel %vm2993_vm4, %v2988_v60, 0.0 }
 0x5bd   :  { %v2990_v28 = vpop.f32.mrf.mxu3  ;;  %v1286_v48 = vmul.f32 %v1265_v17, %v1265_v17 }
 0x5be   :  { %v1266_v23 = vsel %vm3003_vm5, %v2990_v28, 0.0 }
 0x5bf   :  { %v1287_v49 = vmul.f32 %v1266_v23, %v1266_v23  ;;  %v1274_v32 = vadd.f32 %v1266_v23, %v1265_v17 }
 0x5c1   :  { %v1294_v57 = vadd.f32 %v1287_v49, %v1286_v48  ;;  %v2055_v48 = vld [vmem:[%s3289_s5 + $0x50] sm:$0xff] }
 0x5c3   :  { %v2997_v0 = vpop.f32.mrf.mxu2 }
 0x5c4   :  { %v1267_v10 = vsel %vm2993_vm4, %v2997_v0, 0.0 }
 0x5c5   :  { %v3007_v52 = vpop.f32.mrf.mxu3  ;;  %v1288_v39 = vmul.f32 %v1267_v10, %v1267_v10 }
 0x5c6   :  { %v1268_v14 = vsel %vm3003_vm5, %v3007_v52, 0.0 }
 0x5c7   :  { %v1277_v22 = vadd.f32 %v1268_v14, %v1267_v10  ;;  %v1289_v50 = vmul.f32 %v1268_v14, %v1268_v14 }
 0x5c9   :  { %1278 = vadd.xlane.f32.xlu0 %v1277_v22  ;;  %v1297_v63 = vadd.f32 %v1289_v50, %v1288_v39 }
 0x5cb   :  { %v3012_v15 = vpop.f32.mrf.mxu2 }
 0x5cc   :  { %v1269_v31 = vsel %vm2993_vm4, %v3012_v15, 0.0 }
 0x5cd   :  { %v3017_v12 = vpop.f32.mrf.mxu3  ;;  %v1290_v25 = vmul.f32 %v1269_v31, %v1269_v31 }
 0x5ce   :  { %v1270_v19 = vsel %vm3003_vm5, %v3017_v12, 0.0 }
 0x5cf   :  { %v1280_v43 = vadd.f32 %v1270_v19, %v1269_v31  ;;  %v1291_v45 = vmul.f32 %v1270_v19, %v1270_v19 }
 0x5d1   :  { %1281 = vadd.xlane.f32.xlu1 %v1280_v43  ;;  %v1300_v36 = vadd.f32 %v1291_v45, %v1290_v25 }
 0x5d3   :  { %v3022_v46 = vpop.f32.mrf.mxu2 }
 0x5d4   :  { %v1271_v5 = vsel %vm2993_vm4, %v3022_v46, 0.0 }
 0x5d5   :  { %v1292_v6 = vmul.f32 %v1271_v5, %v1271_v5  ;;  %v3027_v21 = vpop.f32.mrf.mxu3 }
 0x5d6   :  { %v1272_v16 = vsel %vm3003_vm5, %v3027_v21, 0.0 }
 0x5d7   :  { %v1293_v34 = vmul.f32 %v1272_v16, %v1272_v16  ;;  %v1283_v29 = vadd.f32 %v1272_v16, %v1271_v5 }
 0x5d9   :  { %1301 = vadd.xlane.f32.xlu1 %v1300_v36  ;;  %1284 = vadd.xlane.f32.xlu0 %v1283_v29  ;;  %v1303_v47 = vadd.f32 %v1293_v34, %v1292_v6 }
 0x5db   :  { %1304 = vadd.xlane.f32.xlu2 %v1303_v47 }
 0x5e1   :  { %1295 = vadd.xlane.f32.xlu1 %v1294_v57  ;;  %1298 = vadd.xlane.f32.xlu0 %v1297_v63  ;;  %v2056_v57 = vld [vmem:[%s3289_s5 + $0x58] sm:$0xff] }
 0x5e3   :  { %1275 = vadd.xlane.f32.xlu2 %v1274_v32 }
 0x63c   :  { %v1279_v54 = vpop.xlane.xlu0 %1278 }
 0x63d   :  { %v3046_v33 = vmul.f32 %v1306_v4, %v1279_v54 }
 0x63f   :  { %v1316_v41 = vmul.f32 %v3046_v33, %v3046_v33 }
 0x644   :  { %v1282_v51 = vpop.xlane.xlu1 %1281 }
 0x645   :  { %v3038_v53 = vmul.f32 %v1306_v4, %v1282_v51 }
 0x647   :  { %v1317_v9 = vmul.f32 %v3038_v53, %v3038_v53 }
 0x64c   :  { %v1302_v56 = vpop.xlane.xlu1 %1301  ;;  %v1285_v8 = vpop.xlane.xlu0 %1284 }
 0x64d   :  { %v1313_v13 = vmul.f32 %v1306_v4, %v1302_v56  ;;  %v3042_v11 = vmul.f32 %v1306_v4, %v1285_v8 }
 0x64e   :  { %v1305_v26 = vpop.xlane.xlu2 %1304 }
 0x64f   :  { %v1321_v20 = vsub.f32 %v1313_v13, %v1317_v9  ;;  %v1318_v62 = vmul.f32 %v3042_v11, %v3042_v11  ;;  %v1314_v61 = vmul.f32 %v1306_v4, %v1305_v26 }
 0x651   :  { %v1325_v30 = vmax.f32 %v1321_v20, 0.0  ;;  %v1322_v24 = vsub.f32 %v1314_v61, %v1318_v62  ;;  %v2060_v20 = vld [vmem:[%s3290_s6 + $0x58] sm:$0xff] }
 0x653   :  { %v1334_v35 = vadd.f32 1e-05, %v1325_v30  ;;  %v1326_v37 = vmax.f32 %v1322_v24, 0.0 }
 0x654   :  { %v1299_v38 = vpop.xlane.xlu0 %1298  ;;  %v1296_v42 = vpop.xlane.xlu1 %1295 }
 0x655   :  { %2315 = vrsqrt.f32 %v1334_v35  ;;  %v1335_v40 = vadd.f32 1e-05, %v1326_v37  ;;  %v1312_v44 = vmul.f32 %v1306_v4, %v1299_v38  ;;  %v1311_v3 = vmul.f32 %v1306_v4, %v1296_v42  ;;  %v2054_v37 = vld [vmem:[%s3289_s5 + $0x48] sm:$0xff] }
 0x656   :  { %v1276_v55 = vpop.xlane.xlu2 %1275  ;;  %vm1362_vm7 = vweird.f32 %v1334_v35 }
 0x657   :  { %2317 = vrsqrt.f32 %v1335_v40  ;;  %v3050_v7 = vmul.f32 %v1306_v4, %v1276_v55  ;;  %v1320_v2 = vsub.f32 %v1312_v44, %v1316_v41  ;;  %vm1372_vm10 = vweird.f32 %v1335_v40  ;;  %v2059_v4 = vld [vmem:[%s3290_s6 + $0x50] sm:$0xff]  ;;  %v2053_v41 = vld [vmem:[%s3289_s5 + $0x40] sm:$0xff] }
 0x659   :  { %v1315_v10 = vmul.f32 %v3050_v7, %v3050_v7  ;;  %v1324_v18 = vmax.f32 %v1320_v2, 0.0 }
 0x65b   :  { %v2316_v14 = vpop.eup %2315  ;;  %v1319_v22 = vsub.f32 %v1311_v3, %v1315_v10  ;;  %v1333_v19 = vadd.f32 1e-05, %v1324_v18  ;;  %v2057_v3 = vld [vmem:[%s3290_s6 + $0x40] sm:$0xff] }
 0x65c   :  { %v1357_v31 = vmul.f32 %v2316_v14, %v1334_v35  ;;  %vm1363_vm6 = vweird.f32 %v2316_v14 }
 0x65d   :  { %v2318_v43 = vpop.eup %2317  ;;  %v1323_v25 = vmax.f32 %v1319_v22, 0.0  ;;  %2319 = vrsqrt.f32 %v1333_v19  ;;  %vm1364_vm9 = vmor %vm1362_vm7, %vm1363_vm6  ;;  %vm1352_vm13 = vweird.f32 %v1333_v19 }
 0x65e   :  { %v1358_v45 = vmul.f32 %v2316_v14, %v1357_v31  ;;  %v1367_v5 = vmul.f32 %v2318_v43, %v1335_v40  ;;  %vm1373_vm8 = vweird.f32 %v2318_v43 }
 0x65f   :  { %v1332_v6 = vadd.f32 1e-05, %v1323_v25  ;;  %vm1374_vm11 = vmor %vm1372_vm10, %vm1373_vm8 }
 0x660   :  { %v1359_v16 = vmul.f32 0.5, %v1358_v45  ;;  %v1368_v34 = vmul.f32 %v2318_v43, %v1367_v5 }
 0x661   :  { %2321 = vrsqrt.f32 %v1332_v6  ;;  %vm1342_vm3 = vweird.f32 %v1332_v6 }
 0x662   :  { %v1360_v36 = vsub.f32 1.5, %v1359_v16  ;;  %v1369_v29 = vmul.f32 0.5, %v1368_v34 }
 0x663   :  { %v2320_v17 = vpop.eup %2319 }
 0x664   :  { %v1361_v23 = vmul.f32 %v2316_v14, %v1360_v36  ;;  %v1370_v47 = vsub.f32 1.5, %v1369_v29  ;;  %v1347_v49 = vmul.f32 %v2320_v17, %v1333_v19  ;;  %vm1353_vm12 = vweird.f32 %v2320_v17 }
 0x665   :  { %vm1354_vm15 = vmor %vm1352_vm13, %vm1353_vm12 }
 0x666   :  { %v1371_v39 = vmul.f32 %v2318_v43, %v1370_v47  ;;  %v1365_v50 = vsel %vm1364_vm9, %v2316_v14, %v1361_v23  ;;  %v1348_v32 = vmul.f32 %v2320_v17, %v1347_v49  ;;  %v2058_v14 = vld [vmem:[%s3290_s6 + $0x48] sm:$0xff] }
 0x667   :  { %v2322_v63 = vpop.eup %2321  ;;  %v1378_v54 = vmul.f32 %v2055_v48, %v1365_v50 }
 0x668   :  { %v1337_v51 = vmul.f32 %v2322_v63, %v1332_v6  ;;  %v1375_v56 = vsel %vm1374_vm11, %v2318_v43, %v1371_v39  ;;  %v1349_v8 = vmul.f32 0.5, %v1348_v32  ;;  %vm1343_vm14 = vweird.f32 %v2322_v63 }
 0x669   :  { %v1387_v9 = vmul.f32 %v1378_v54, %v3038_v53  ;;  %v1379_v13 = vmul.f32 %v2056_v57, %v1375_v56  ;;  %vm1344_vm4 = vmor %vm1342_vm3, %vm1343_vm14  ;;  %vm1948_vm3 = vcmask 261120  }
 0x66a   :  { %v1338_v26 = vmul.f32 %v2322_v63, %v1337_v51  ;;  %v1350_v62 = vsub.f32 1.5, %v1349_v8 }
 0x66b   :  { %v1391_v61 = vsub.f32 %v2059_v4, %v1387_v9  ;;  %v1388_v30 = vmul.f32 %v1379_v13, %v3042_v11 }
 0x66c   :  { %v1339_v24 = vmul.f32 0.5, %v1338_v26  ;;  %v1351_v53 = vmul.f32 %v2320_v17, %v1350_v62 }
 0x66d   :  { %1433 = vperm.xlu2 %2118, %v1391_v61   ;;  %v1392_v35 = vsub.f32 %v2060_v20, %v1388_v30 }
 0x66e   :  { %v1340_v38 = vsub.f32 1.5, %v1339_v24  ;;  %v1355_v40 = vsel %vm1354_vm15, %v2320_v17, %v1351_v53 }
 0x66f   :  { %1438 = vperm.xlu1 %2117, %v1392_v35   ;;  %v1377_v42 = vmul.f32 %v2054_v37, %v1355_v40 }
 0x670   :  { %v1341_v11 = vmul.f32 %v2322_v63, %v1340_v38 }
 0x671   :  { %1400 = vperm.xlu0 %2116, %v1377_v42   ;;  %v1386_v18 = vmul.f32 %v1377_v42, %v3046_v33 }
 0x672   :  { %v1345_v44 = vsel %vm1344_vm4, %v2322_v63, %v1341_v11  ;;  %vm1995_vm4 = vcmask 1040384  }
 0x673   :  { %v1376_v55 = vmul.f32 %v2053_v41, %v1345_v44  ;;  %v1390_v22 = vsub.f32 %v2058_v14, %v1386_v18 }
 0x675   :  { %1410 = vperm.xlu2 %2118, %v1379_v13   ;;  %v1385_v2 = vmul.f32 %v1376_v55, %v3050_v7 }
 0x677   :  { %1395 = vperm.xlu1 %2117, %v1376_v55   ;;  %v1389_v10 = vsub.f32 %v2057_v3, %v1385_v2 }
 0x679   :  { %1405 = vperm.xlu0 %2116, %v1378_v54  }
 0x67d   :  { %1423 = vperm.xlu2 %2118, %v1389_v10  }
 0x681   :  { %1428 = vperm.xlu0 %2116, %v1390_v22  }
 0x6c7   :  { %v1434_v31 = vpop.permute.xlu2 %1433 }
 0x6cf   :  { %v1411_v19 = vpop.permute.xlu2 %1410 }
 0x6d0   :  { %v1419_v32 = vmul.f32 %v1411_v19, %v3022_v46  ;;  %v1420_v54 = vmul.f32 %v1411_v19, %v3027_v21 }
 0x6d7   :  { %v1424_v6 = vpop.permute.xlu2 %1423 }
 0x6e1   :  { %v1439_v43 = vpop.permute.xlu1 %1438 }
 0x6e2   :  { %v1448_v8 = vadd.f32 %v1439_v43, %v1420_v54 }
 0x6e3   :  { %v1401_v7 = vpop.permute.xlu0 %1400 }
 0x6e4   :  { %v3117_v21 = vmax.f32 %v1448_v8, 0.0 }
 0x6e9   :  { %v1396_v25 = vpop.permute.xlu1 %1395 }
 0x6ea   :  { %v1413_v45 = vmul.f32 %v1396_v25, %v2988_v60  ;;  %v1414_v5 = vmul.f32 %v1396_v25, %v2990_v28  ;;  %v1415_v28 = vmul.f32 %v1401_v7, %v2997_v0 }
 0x6eb   :  { %v1406_v33 = vpop.permute.xlu0 %1405 }
 0x6ec   :  { %v1441_v16 = vadd.f32 %v1424_v6, %v1413_v45  ;;  %v1442_v34 = vadd.f32 %v1424_v6, %v1414_v5  ;;  %v1417_v36 = vmul.f32 %v1406_v33, %v3012_v15  ;;  %v1418_v29 = vmul.f32 %v1406_v33, %v3017_v12 }
 0x6ed   :  { %v1416_v15 = vmul.f32 %v1401_v7, %v3007_v52  ;;  %v1447_v52 = vadd.f32 %v1439_v43, %v1419_v32 }
 0x6ee   :  { %v3086_v17 = vmax.f32 %v1441_v16, 0.0  ;;  %v3088_v23 = vmax.f32 %v1442_v34, 0.0  ;;  %v1445_v47 = vadd.f32 %v1434_v31, %v1417_v36  ;;  %v1446_v48 = vadd.f32 %v1434_v31, %v1418_v29 }
 0x6ef   :  { %v3115_v46 = vmax.f32 %v1447_v52, 0.0 }
 0x6f0   :  { %v2244_v49 = vpack.i.bf16 0.0, %v3088_v23  ;;  %v2239_v60 = vpack.i.bf16 %v3086_v17, %v2390_v27  ;;  %v3097_v12 = vmax.f32 %v1445_v47, 0.0  ;;  %v3099_v39 = vmax.f32 %v1446_v48, 0.0 }
 0x6f1   :  { %v2274_v13 = vpack.i.bf16 %v3117_v21, %v3115_v46 }
 0x6f2   :  { %2245 = vrot.lane.b32.xlu2 %v2244_v49, %s2389_s2  ;;  %2240 = vrot.lane.b32.xlu0 %v2239_v60, %s2389_s2  ;;  %v2259_v56 = vpack.i.bf16 0.0, %v3099_v39  ;;  %v2254_v0 = vpack.i.bf16 %v3097_v12, %v2390_v27 }
 0x6f3   :  { %v1429_v50 = vpop.permute.xlu0 %1428 }
 0x6f4   :  { %v1443_v57 = vadd.f32 %v1429_v50, %v1415_v28  ;;  %v1444_v63 = vadd.f32 %v1429_v50, %v1416_v15 }
 0x6f6   :  { %v3103_v51 = vmax.f32 %v1443_v57, 0.0  ;;  %v3105_v4 = vmax.f32 %v1444_v63, 0.0 }
 0x6f8   :  { %v2249_v9 = vpack.i.bf16 %v3105_v4, %v3103_v51 }
 0x6fa   :  { %2260 = vrot.lane.b32.xlu2 %v2259_v56, %s2389_s2  ;;  %2255 = vrot.lane.b32.xlu0 %v2254_v0, %s2389_s2 }
 0x6fb   :  { %2250 = vrot.lane.b32.xlu1 %v2249_v9, %s2389_s2 }
 0x702   :  { %2270 = vrot.lane.b32.xlu2 %v2259_v56, %s2388_s0  ;;  %2265 = vrot.lane.b32.xlu0 %v2254_v0, %s2388_s0 }
 0x703   :  { %2275 = vrot.lane.b32.xlu1 %v2274_v13, %s2389_s2 }
 0x70a   :  { %2295 = vrot.lane.b32.xlu2 %v2244_v49, %s2388_s0  ;;  %2290 = vrot.lane.b32.xlu0 %v2239_v60, %s2388_s0 }
 0x70b   :  { %2280 = vrot.lane.b32.xlu1 %v2274_v13, %s2388_s0 }
 0x713   :  { %2285 = vrot.lane.b32.xlu1 %v2249_v9, %s2388_s0  ;;  %s2008_s0 = sshll.u32 %s2391_s18, 4  ;;  %s2009_s0 = int_to_ptr.vmem [resolvable:$true] %s2008_s0 }
 0x74c   :  { %v2246_v26 = vpop.permute.xlu2 %2245 }
 0x74d   :  { %v2248_v18 = vunpack.i.h.bf16 %v2246_v26  ;;  %v2247_v14 = vunpack.i.l.bf16 %v2246_v26 }
 0x74f   :  { %v1602_v36 = vsel %vm300_vm1, %v2247_v14, %v2248_v18 }
 0x754   :  { %v2261_v61 = vpop.permute.xlu2 %2260 }
 0x755   :  { %v2263_v38 = vunpack.i.h.bf16 %v2261_v61  ;;  %v2262_v40 = vunpack.i.l.bf16 %v2261_v61 }
 0x757   :  { %v1606_v31 = vsel %vm300_vm1, %v2262_v40, %v2263_v38 }
 0x75c   :  { %v2271_v3 = vpop.permute.xlu2 %2270 }
 0x75d   :  { %v2273_v34 = vunpack.i.h.bf16 %v2271_v3  ;;  %v2272_v33 = vunpack.i.l.bf16 %v2271_v3 }
 0x75f   :  { %v1534_v60 = vsel %vm207_vm0, %v2272_v33, %v2273_v34 }
 0x764   :  { %v2241_v27 = vpop.permute.xlu0 %2240  ;;  %v2296_v28 = vpop.permute.xlu2 %2295 }
 0x765   :  { %v2243_v55 = vunpack.i.h.bf16 %v2241_v27  ;;  %v2242_v22 = vunpack.i.l.bf16 %v2241_v27  ;;  %v2298_v54 = vunpack.i.h.bf16 %v2296_v28  ;;  %v2297_v56 = vunpack.i.l.bf16 %v2296_v28 }
 0x767   :  { %v1601_v25 = vsel %vm300_vm1, %v2243_v55, %v2247_v14  ;;  %v1530_v9 = vsel %vm207_vm0, %v2297_v56, %v2298_v54 }
 0x76c   :  { %v2256_v62 = vpop.permute.xlu0 %2255 }
 0x76d   :  { %v2251_v20 = vpop.permute.xlu1 %2250  ;;  %v2258_v24 = vunpack.i.h.bf16 %v2256_v62  ;;  %v2257_v35 = vunpack.i.l.bf16 %v2256_v62 }
 0x76e   :  { %v2253_v41 = vunpack.i.h.bf16 %v2251_v20  ;;  %v2252_v11 = vunpack.i.l.bf16 %v2251_v20 }
 0x76f   :  { %v1605_v10 = vsel %vm300_vm1, %v2258_v24, %v2262_v40 }
 0x770   :  { %v1603_v19 = vsel %vm300_vm1, %v2252_v11, %v2253_v41  ;;  %v1604_v7 = vsel %vm300_vm1, %v2253_v41, %v2242_v22 }
 0x774   :  { %v2266_v2 = vpop.permute.xlu0 %2265 }
 0x775   :  { %v2276_v30 = vpop.permute.xlu1 %2275  ;;  %v2268_v45 = vunpack.i.h.bf16 %v2266_v2  ;;  %v2267_v5 = vunpack.i.l.bf16 %v2266_v2 }
 0x776   :  { %v2278_v37 = vunpack.i.h.bf16 %v2276_v30  ;;  %v2277_v53 = vunpack.i.l.bf16 %v2276_v30 }
 0x777   :  { %v1533_v48 = vsel %vm207_vm0, %v2268_v45, %v2272_v33 }
 0x778   :  { %v1607_v42 = vsel %vm300_vm1, %v2277_v53, %v2278_v37  ;;  %v1608_v44 = vsel %vm300_vm1, %v2278_v37, %v2257_v35 }
 0x779   :  { %1670 = vmatpush.msrb.mxu0 %v1607_v42  ;;  %2085 = vmatpush.msrb.mxu2 %v1607_v42 }
 0x77a   :  { %1699 = vmatpush.msrb.mxu1 %v1608_v44  ;;  %2097 = vmatpush.msrb.mxu3 %v1608_v44 }
 0x77b   :  { %1671 = vmatpush.msrb.mxu0 %v1605_v10  ;;  %2086 = vmatpush.msrb.mxu2 %v1605_v10 }
 0x77c   :  { %1700 = vmatpush.msrb.mxu1 %v1606_v31  ;;  %2098 = vmatpush.msrb.mxu3 %v1606_v31  ;;  %v2291_v49 = vpop.permute.xlu0 %2290 }
 0x77d   :  { %v2281_v43 = vpop.permute.xlu1 %2280  ;;  %1672 = vmatpush.msrb.mxu0 %v1603_v19  ;;  %2087 = vmatpush.msrb.mxu2 %v1603_v19  ;;  %v2293_v50 = vunpack.i.h.bf16 %v2291_v49  ;;  %v2292_v57 = vunpack.i.l.bf16 %v2291_v49 }
 0x77e   :  { %v2283_v6 = vunpack.i.h.bf16 %v2281_v43  ;;  %v2282_v16 = vunpack.i.l.bf16 %v2281_v43  ;;  %1701 = vmatpush.msrb.mxu1 %v1604_v7  ;;  %2099 = vmatpush.msrb.mxu3 %v1604_v7 }
 0x77f   :  { %1673 = vmatpush.msrb.mxu0 %v1601_v25  ;;  %2088 = vmatpush.msrb.mxu2 %v1601_v25  ;;  %v1529_v8 = vsel %vm207_vm0, %v2293_v50, %v2297_v56 }
 0x780   :  { %1702 = vmatpush.msrb.mxu1 %v1602_v36  ;;  %2100 = vmatpush.msrb.mxu3 %v1602_v36  ;;  %v1535_v29 = vsel %vm207_vm0, %v2282_v16, %v2283_v6  ;;  %v1536_v47 = vsel %vm207_vm0, %v2283_v6, %v2267_v5 }
 0x781   :  { %1674 = vmatpush.msrb.mxu0 %v1535_v29  ;;  %2089 = vmatpush.msrb.mxu2 %v1535_v29 }
 0x782   :  { %1703 = vmatpush.msrb.mxu1 %v1536_v47  ;;  %2101 = vmatpush.msrb.mxu3 %v1536_v47 }
 0x783   :  { %1675 = vmatpush.msrb.mxu0 %v1533_v48  ;;  %2090 = vmatpush.msrb.mxu2 %v1533_v48 }
 0x784   :  { %1704 = vmatpush.msrb.mxu1 %v1534_v60  ;;  %2102 = vmatpush.msrb.mxu3 %v1534_v60 }
 0x785   :  { %v2286_v15 = vpop.permute.xlu1 %2285 }
 0x786   :  { %v2288_v63 = vunpack.i.h.bf16 %v2286_v15  ;;  %v2287_v32 = vunpack.i.l.bf16 %v2286_v15 }
 0x788   :  { %v1531_v0 = vsel %vm207_vm0, %v2287_v32, %v2288_v63  ;;  %v1532_v52 = vsel %vm207_vm0, %v2288_v63, %v2292_v57 }
 0x789   :  { %1676 = vmatpush.msrb.mxu0 %v1531_v0  ;;  %2091 = vmatpush.msrb.mxu2 %v1531_v0 }
 0x78a   :  { %1705 = vmatpush.msrb.mxu1 %v1532_v52  ;;  %2103 = vmatpush.msrb.mxu3 %v1532_v52 }
 0x78b   :  { %1677 = vmatpush.msrb.mxu0 %v1529_v8  ;;  %2092 = vmatpush.msrb.mxu2 %v1529_v8 }
 0x78c   :  { %1706 = vmatpush.msrb.mxu1 %v1530_v9  ;;  %2104 = vmatpush.msrb.mxu3 %v1530_v9 }
 0x78d   :  { %1678 = vmatpush.msrb.mxu0 %v3115_v46  ;;  %2093 = vmatpush.msrb.mxu2 %v3115_v46  ;;  %v2061_v46 = vld [vmem:[%s3288_s4 + $0x40] sm:$0xff] }
 0x78e   :  { %1707 = vmatpush.msrb.mxu1 %v3117_v21  ;;  %2105 = vmatpush.msrb.mxu3 %v3117_v21 }
 0x78f   :  { %1679 = vmatpush.msrb.mxu0 %v3097_v12  ;;  %2094 = vmatpush.msrb.mxu2 %v3097_v12  ;;  %v2064_v12 = vld [vmem:[%s3288_s4 + $0x58] sm:$0xff] }
 0x790   :  { %1708 = vmatpush.msrb.mxu1 %v3099_v39  ;;  %2106 = vmatpush.msrb.mxu3 %v3099_v39  ;;  %v2062_v39 = vld [vmem:[%s3288_s4 + $0x48] sm:$0xff] }
 0x791   :  { %1680 = vmatpush.msrb.mxu0 %v3103_v51  ;;  %2095 = vmatpush.msrb.mxu2 %v3103_v51 }
 0x792   :  { %1709 = vmatpush.msrb.mxu1 %v3105_v4  ;;  %2107 = vmatpush.msrb.mxu3 %v3105_v4  ;;  %v1725_v4 = vstv %s2073_s22 }
 0x793   :  { %1681 = vmatpush.msrb.mxu0 %v3086_v17  ;;  %2096 = vmatpush.msrb.mxu2 %v3086_v17  ;;  %v2063_v17 = vld [vmem:[%s3288_s4 + $0x50] sm:$0xff]  ;;  %vm3185_vm0 = vcmp.lt.s32.totalorder %v2539_v59, %v1725_v4  ;;  %vm3192_vm1 = vcmp.lt.s32.totalorder %v2543_v1, %v1725_v4  ;;  %s2074_s4 = sld [smem:[#allocation8 + $0x3]] }
 0x794   :  { %1710 = vmatpush.msrb.mxu1 %v3088_v23  ;;  %2108 = vmatpush.msrb.mxu3 %v3088_v23 }
 0x795   :  { %2065 = vmatmul.msk.f32.vlgmr.msrb.gmra.mxu0 %vm719_vm2, %v2061_v46  ;;  %2068 = vmatmul.msk.f32.vlgmr.msrb.gmra.mxu2 %vm719_vm2, %v2064_v12 }
 0x796   :  { %2069 = vmatmul.msk.f32.vlgmr.msrb.gmra.mxu1 %vm719_vm2, %v2061_v46  ;;  %2072 = vmatmul.msk.f32.vlgmr.msrb.gmra.mxu3 %vm719_vm2, %v2064_v12 }
 0x799   :  { %v1773_v45 = vstv %s2074_s4 }
 0x79d   :  { %2066 = vmatmul.msk.f32.gmra.mxu0 %vm719_vm2, %v2062_v39 }
 0x79e   :  { %2070 = vmatmul.msk.f32.gmra.mxu1 %vm719_vm2, %v2062_v39 }
 0x7a5   :  { %2067 = vmatmul.msk.f32.gmra.mxu0 %vm719_vm2, %v2063_v17 }
 0x7a6   :  { %2071 = vmatmul.msk.f32.gmra.mxu1 %vm719_vm2, %v2063_v17 }
 0x812   :  { %v3180_v23 = vpop.f32.mrf.mxu0 }
 0x813   :  { %v3182_v51 = vpop.f32.mrf.mxu1  ;;  %v1732_v38 = vsel %vm3185_vm0, %v3180_v23, 0.0 }
 0x814   :  { %v1733_v40 = vsel %vm3192_vm1, %v3182_v51, 0.0  ;;  %v1753_v43 = vmul.f32 %v1732_v38, %v1732_v38 }
 0x815   :  { %v1741_v2 = vadd.f32 %v1733_v40, %v1732_v38  ;;  %v1754_v7 = vmul.f32 %v1733_v40, %v1733_v40  ;;  %v2082_v40 = vld [vmem:[%s3290_s6 + $0x78] sm:$0xff] }
 0x817   :  { %v1761_v25 = vadd.f32 %v1754_v7, %v1753_v43 }
 0x818   :  { %v3189_v13 = vpop.f32.mrf.mxu2 }
 0x819   :  { %v1738_v26 = vsel %vm3185_vm0, %v3189_v13, 0.0  ;;  %v3199_v20 = vpop.f32.mrf.mxu3 }
 0x81a   :  { %v1759_v62 = vmul.f32 %v1738_v26, %v1738_v26  ;;  %v1739_v59 = vsel %vm3192_vm1, %v3199_v20, 0.0  ;;  %v3204_v61 = vpop.f32.mrf.mxu0 }
 0x81b   :  { %v1760_v30 = vmul.f32 %v1739_v59, %v1739_v59  ;;  %v3206_v24 = vpop.f32.mrf.mxu1  ;;  %v1750_v1 = vadd.f32 %v1739_v59, %v1738_v26  ;;  %v1734_v37 = vsel %vm3185_vm0, %v3204_v61, 0.0  ;;  %v2078_v59 = vld [vmem:[%s3289_s5 + $0x78] sm:$0xff] }
 0x81c   :  { %v1735_v53 = vsel %vm3192_vm1, %v3206_v24, 0.0  ;;  %v1755_v10 = vmul.f32 %v1734_v37, %v1734_v37 }
 0x81d   :  { %1751 = vadd.xlane.f32.xlu1 %v1750_v1  ;;  %v1770_v35 = vadd.f32 %v1760_v30, %v1759_v62  ;;  %v1744_v44 = vadd.f32 %v1735_v53, %v1734_v37  ;;  %v1756_v18 = vmul.f32 %v1735_v53, %v1735_v53 }
 0x81f   :  { %1771 = vadd.xlane.f32.xlu2 %v1770_v35  ;;  %v1764_v31 = vadd.f32 %v1756_v18, %v1755_v10 }
 0x822   :  { %v3220_v41 = vpop.f32.mrf.mxu0 }
 0x823   :  { %v1736_v11 = vsel %vm3185_vm0, %v3220_v41, 0.0  ;;  %v3225_v42 = vpop.f32.mrf.mxu1  ;;  %vm2000_vm0 = vcmp.lt.s32.totalorder %v60_v58, 256 }
 0x824   :  { %v1737_v55 = vsel %vm3192_vm1, %v3225_v42, 0.0  ;;  %v1757_v14 = vmul.f32 %v1736_v11, %v1736_v11 }
 0x825   :  { %1745 = vadd.xlane.f32.xlu1 %v1744_v44  ;;  %v1747_v3 = vadd.f32 %v1737_v55, %v1736_v11  ;;  %v1758_v22 = vmul.f32 %v1737_v55, %v1737_v55 }
 0x827   :  { %1742 = vadd.xlane.f32.xlu2 %v1741_v2  ;;  %1748 = vadd.xlane.f32.xlu0 %v1747_v3  ;;  %v1767_v19 = vadd.f32 %v1758_v22, %v1757_v14 }
 0x82d   :  { %1765 = vadd.xlane.f32.xlu1 %v1764_v31 }
 0x82f   :  { %1768 = vadd.xlane.f32.xlu0 %v1767_v19 }
 0x837   :  { %1762 = vadd.xlane.f32.xlu0 %v1761_v25 }
 0x890   :  { %v1752_v5 = vpop.xlane.xlu1 %1751 }
 0x891   :  { %v1777_v6 = vmul.f32 %v1773_v45, %v1752_v5 }
 0x892   :  { %v1772_v16 = vpop.xlane.xlu2 %1771 }
 0x893   :  { %v1785_v34 = vmul.f32 %v1777_v6, %v1777_v6  ;;  %v1781_v33 = vmul.f32 %v1773_v45, %v1772_v16 }
 0x895   :  { %v1789_v36 = vsub.f32 %v1781_v33, %v1785_v34  ;;  %v2077_v33 = vld [vmem:[%s3289_s5 + $0x70] sm:$0xff] }
 0x897   :  { %v1793_v29 = vmax.f32 %v1789_v36, 0.0 }
 0x898   :  { %v1746_v47 = vpop.xlane.xlu1 %1745 }
 0x899   :  { %v1802_v48 = vadd.f32 1e-05, %v1793_v29  ;;  %v3230_v60 = vmul.f32 %v1773_v45, %v1746_v47 }
 0x89a   :  { %v1749_v49 = vpop.xlane.xlu0 %1748  ;;  %v1743_v9 = vpop.xlane.xlu2 %1742 }
 0x89b   :  { %2323 = vrsqrt.f32 %v1802_v48  ;;  %v3232_v28 = vmul.f32 %v1773_v45, %v1749_v49  ;;  %v1783_v57 = vmul.f32 %v3230_v60, %v3230_v60  ;;  %v3238_v17 = vmul.f32 %v1773_v45, %v1743_v9 }
 0x89c   :  { %vm1839_vm2 = vweird.f32 %v1802_v48 }
 0x89d   :  { %v1784_v56 = vmul.f32 %v3232_v28, %v3232_v28  ;;  %v1782_v1 = vmul.f32 %v3238_v17, %v3238_v17 }
 0x8a0   :  { %v1766_v15 = vpop.xlane.xlu1 %1765 }
 0x8a1   :  { %v2324_v50 = vpop.eup %2323  ;;  %v1779_v63 = vmul.f32 %v1773_v45, %v1766_v15 }
 0x8a2   :  { %v1834_v32 = vmul.f32 %v2324_v50, %v1802_v48  ;;  %v1769_v54 = vpop.xlane.xlu0 %1768  ;;  %vm1840_vm5 = vweird.f32 %v2324_v50 }
 0x8a3   :  { %v1787_v0 = vsub.f32 %v1779_v63, %v1783_v57  ;;  %v1780_v52 = vmul.f32 %v1773_v45, %v1769_v54  ;;  %vm1841_vm6 = vmor %vm1839_vm2, %vm1840_vm5  ;;  %v2080_v54 = vld [vmem:[%s3290_s6 + $0x68] sm:$0xff] }
 0x8a4   :  { %v1835_v8 = vmul.f32 %v2324_v50, %v1834_v32 }
 0x8a5   :  { %v1791_v46 = vmax.f32 %v1787_v0, 0.0  ;;  %v1788_v12 = vsub.f32 %v1780_v52, %v1784_v56  ;;  %v2075_v0 = vld [vmem:[%s3289_s5 + $0x60] sm:$0xff] }
 0x8a6   :  { %v1836_v39 = vmul.f32 0.5, %v1835_v8 }
 0x8a7   :  { %v1800_v4 = vadd.f32 1e-05, %v1791_v46  ;;  %v1792_v21 = vmax.f32 %v1788_v12, 0.0 }
 0x8a8   :  { %v1837_v27 = vsub.f32 1.5, %v1836_v39  ;;  %v1941_v39 = vld [vmem:[#allocation4] sm:$0x1] }
 0x8a9   :  { %2325 = vrsqrt.f32 %v1800_v4  ;;  %v1801_v26 = vadd.f32 1e-05, %v1792_v21  ;;  %vm1819_vm8 = vweird.f32 %v1800_v4 }
 0x8aa   :  { %v1763_v62 = vpop.xlane.xlu0 %1762  ;;  %v1838_v30 = vmul.f32 %v2324_v50, %v1837_v27 }
 0x8ab   :  { %2327 = vrsqrt.f32 %v1801_v26  ;;  %v1778_v35 = vmul.f32 %v1773_v45, %v1763_v62  ;;  %v2076_v45 = vld [vmem:[%s3289_s5 + $0x68] sm:$0xff]  ;;  %vm1829_vm11 = vweird.f32 %v1801_v26 }
 0x8ac   :  { %v1842_v37 = vsel %vm1841_vm6, %v2324_v50, %v1838_v30  ;;  %v2081_v50 = vld [vmem:[%s3290_s6 + $0x70] sm:$0xff] }
 0x8ad   :  { %v1786_v53 = vsub.f32 %v1778_v35, %v1782_v1  ;;  %v1846_v38 = vmul.f32 %v2078_v59, %v1842_v37 }
 0x8af   :  { %v2326_v11 = vpop.eup %2325  ;;  %v1790_v44 = vmax.f32 %v1786_v53, 0.0  ;;  %1877 = vperm.xlu2 %2118, %v1846_v38   ;;  %v1855_v55 = vmul.f32 %v1846_v38, %v1777_v6 }
 0x8b0   :  { %v1814_v2 = vmul.f32 %v2326_v11, %v1800_v4  ;;  %vm1820_vm7 = vweird.f32 %v2326_v11 }
 0x8b1   :  { %v2328_v3 = vpop.eup %2327  ;;  %v1799_v10 = vadd.f32 1e-05, %v1790_v44  ;;  %v1859_v18 = vsub.f32 %v2082_v40, %v1855_v55  ;;  %vm1821_vm10 = vmor %vm1819_vm8, %vm1820_vm7 }
 0x8b2   :  { %v1815_v14 = vmul.f32 %v2326_v11, %v1814_v2  ;;  %v1824_v22 = vmul.f32 %v2328_v3, %v1801_v26  ;;  %vm1830_vm9 = vweird.f32 %v2328_v3 }
 0x8b3   :  { %2329 = vrsqrt.f32 %v1799_v10  ;;  %1905 = vperm.xlu0 %2116, %v1859_v18   ;;  %vm1831_vm12 = vmor %vm1829_vm11, %vm1830_vm9  ;;  %vm1809_vm14 = vweird.f32 %v1799_v10 }
 0x8b4   :  { %v1816_v31 = vmul.f32 0.5, %v1815_v14  ;;  %v1825_v19 = vmul.f32 %v2328_v3, %v1824_v22 }
 0x8b6   :  { %v1817_v43 = vsub.f32 1.5, %v1816_v31  ;;  %v1826_v7 = vmul.f32 0.5, %v1825_v19 }
 0x8b8   :  { %v1827_v25 = vsub.f32 1.5, %v1826_v7  ;;  %v1818_v5 = vmul.f32 %v2326_v11, %v1817_v43  ;;  %v1932_v7 = vld [vmem:[%s3291_s7] sm:$0x1] }
 0x8b9   :  { %v2330_v6 = vpop.eup %2329 }
 0x8ba   :  { %v1804_v16 = vmul.f32 %v2330_v6, %v1799_v10  ;;  %v1822_v34 = vsel %vm1821_vm10, %v2326_v11, %v1818_v5  ;;  %v1828_v36 = vmul.f32 %v2328_v3, %v1827_v25  ;;  %vm1810_vm13 = vweird.f32 %v2330_v6 }
 0x8bb   :  { %v1844_v29 = vmul.f32 %v2076_v45, %v1822_v34  ;;  %vm1811_vm15 = vmor %vm1809_vm14, %vm1810_vm13 }
 0x8bc   :  { %v1805_v47 = vmul.f32 %v2330_v6, %v1804_v16  ;;  %v1832_v48 = vsel %vm1831_vm12, %v2328_v3, %v1828_v36 }
 0x8bd   :  { %1867 = vperm.xlu2 %2118, %v1844_v29   ;;  %v1845_v49 = vmul.f32 %v2077_v33, %v1832_v48  ;;  %v1853_v63 = vmul.f32 %v1844_v29, %v3230_v60  ;;  %v2079_v60 = vld [vmem:[%s3290_s6 + $0x60] sm:$0xff] }
 0x8be   :  { %v1806_v15 = vmul.f32 0.5, %v1805_v47 }
 0x8bf   :  { %1872 = vperm.xlu1 %2117, %v1845_v49   ;;  %v1854_v57 = vmul.f32 %v1845_v49, %v3232_v28  ;;  %v1857_v8 = vsub.f32 %v2080_v54, %v1853_v63 }
 0x8c0   :  { %v1807_v32 = vsub.f32 1.5, %v1806_v15 }
 0x8c1   :  { %v1858_v56 = vsub.f32 %v2081_v50, %v1854_v57 }
 0x8c2   :  { %v1808_v52 = vmul.f32 %v2330_v6, %v1807_v32 }
 0x8c3   :  { %1900 = vperm.xlu0 %2116, %v1858_v56  }
 0x8c4   :  { %v1812_v9 = vsel %vm1811_vm15, %v2330_v6, %v1808_v52 }
 0x8c5   :  { %1895 = vperm.xlu2 %2118, %v1857_v8   ;;  %v1843_v28 = vmul.f32 %v2075_v0, %v1812_v9 }
 0x8c7   :  { %1862 = vperm.xlu1 %2117, %v1843_v28   ;;  %v1852_v46 = vmul.f32 %v1843_v28, %v3238_v17 }
 0x8c9   :  { %v1856_v12 = vsub.f32 %v2079_v60, %v1852_v46 }
 0x8cb   :  { %1890 = vperm.xlu0 %2116, %v1856_v12  }
 0x8cf   :  { %1944 = vperm.xlu1 %2117, %v1941_v39  }
 0x909   :  { %v1878_v4 = vpop.permute.xlu2 %1877 }
 0x90a   :  { %v1886_v21 = vmul.f32 %v1878_v4, %v3189_v13  ;;  %v1887_v27 = vmul.f32 %v1878_v4, %v3199_v20 }
 0x917   :  { %v1868_v35 = vpop.permute.xlu2 %1867 }
 0x918   :  { %v1882_v17 = vmul.f32 %v1868_v35, %v3204_v61  ;;  %v1883_v38 = vmul.f32 %v1868_v35, %v3206_v24 }
 0x91f   :  { %v1896_v53 = vpop.permute.xlu2 %1895 }
 0x920   :  { %v1910_v20 = vadd.f32 %v1896_v53, %v1882_v17  ;;  %v1911_v44 = vadd.f32 %v1896_v53, %v1883_v38 }
 0x922   :  { %v1918_v14 = vmax.f32 %v1910_v20, 0.0  ;;  %v1919_v22 = vmax.f32 %v1911_v44, 0.0 }
 0x925   :  { %v1906_v26 = vpop.permute.xlu0 %1905 }
 0x926   :  { %v1914_v62 = vadd.f32 %v1906_v26, %v1886_v21  ;;  %v1915_v59 = vadd.f32 %v1906_v26, %v1887_v27 }
 0x928   :  { %v1922_v30 = vmax.f32 %v1914_v62, 0.0  ;;  %v1923_v1 = vmax.f32 %v1915_v59, 0.0 }
 0x92a   :  { %1964 = vmatpush.msra.mxu2 %v1922_v30  ;;  %1984 = vmatpush.msra.mxu3 %v1923_v1 }
 0x931   :  { %v1873_v37 = vpop.permute.xlu1 %1872 }
 0x932   :  { %v1884_v40 = vmul.f32 %v1873_v37, %v3220_v41  ;;  %v1885_v13 = vmul.f32 %v1873_v37, %v3225_v42 }
 0x935   :  { %v1901_v11 = vpop.permute.xlu0 %1900 }
 0x936   :  { %v1912_v55 = vadd.f32 %v1901_v11, %v1884_v40  ;;  %v1913_v2 = vadd.f32 %v1901_v11, %v1885_v13 }
 0x938   :  { %v1920_v3 = vmax.f32 %v1912_v55, 0.0  ;;  %v1921_v10 = vmax.f32 %v1913_v2, 0.0 }
 0x939   :  { %v1863_v18 = vpop.permute.xlu1 %1862 }
 0x93a   :  { %1965 = vmatpush.msra.mxu2 %v1920_v3  ;;  %1985 = vmatpush.msra.mxu3 %v1921_v10  ;;  %v1880_v61 = vmul.f32 %v1863_v18, %v3180_v23  ;;  %v1881_v24 = vmul.f32 %v1863_v18, %v3182_v51 }
 0x93c   :  { %1966 = vmatpush.msra.mxu2 %v1918_v14  ;;  %1986 = vmatpush.msra.mxu3 %v1919_v22 }
 0x93d   :  { %v1891_v41 = vpop.permute.xlu0 %1890 }
 0x93e   :  { %v1908_v42 = vadd.f32 %v1891_v41, %v1880_v61  ;;  %v1909_v31 = vadd.f32 %v1891_v41, %v1881_v24 }
 0x940   :  { %v1916_v19 = vmax.f32 %v1908_v42, 0.0  ;;  %v1917_v43 = vmax.f32 %v1909_v31, 0.0 }
 0x941   :  { %v1945_v25 = vpop.permute.xlu1 %1944 }
 0x942   :  { %1967 = vmatpush.msra.mxu2 %v1916_v19  ;;  %1987 = vmatpush.msra.mxu3 %v1917_v43  ;;  %v1947_v23 = vperm.slane %v1945_v25, 0 }
 0x943   :  { %2083 = vmatmul.msk.f32.vlgmr.msra.gmra.mxu2 %vm1948_vm3, %v1932_v7  ;;  %2084 = vmatmul.msk.f32.vlgmr.msra.gmra.mxu3 %vm1948_vm3, %v1932_v7 }
 0x9c6   :  { %v1969_v45 = vpop.f32.mrf.mxu2  ;;  %v1989_v51 = vpop.f32.mrf.mxu3 }
 0x9c7   :  { %v1990_v5 = vadd.f32 %v1989_v51, %v1947_v23  ;;  %v1970_v6 = vadd.f32 %v1969_v45, %v1947_v23 }
 0x9c9   :  { %v1994_v16 = vrot.slane %v1990_v5, 7 }
 0x9cb   :  { %v1996_v34 = vsel %vm1995_vm4, %v1970_v6, %v1994_v16 }
 0x9cc   :  { %2002 = vst.msk [vmem:[#allocation10] sm:$0x3] %vm2000_vm0, %v1996_v34 }
 0x9cd   :  { %2013 = dma.vmem_to_hbm [thread:$0]  %s2009_s0, 32, %s2011_s19, [#allocation6]  }
 0x9ce   :  { %2383 = dma.done.wait [#allocation6], 32  }
 0x9cf   :  { %2384 = vsyncadd [#allocation6], 4294967264 }
 0x9d0   :  { %2018 = vsyncpa [#allocation6], 1 }
 0x9d1   :  { %2019 = vsyncpa [#allocation7], 1 }
 0x9d2   :  { %2020 = vsyncpa [#allocation9], 1 }

</bundles_post_ra>
